<compile_context>
chip_gen: v7x
topology: tpu7x:2x2x1
jax: 0.10.0
libtpu: 0.0.40
codegen_flags: <defaults>
</compile_context>

<pallas_src>
import functools
import math

import jax
import jax.numpy as jnp
from jax import lax
from jax.experimental import pallas as pl
from jax.experimental.pallas import tpu as pltpu


# ----------------------------- hardware-aware defaults -----------------------------

def _tpu_vmem_bytes(default=64 * 1024 * 1024):
    try:
        info = pltpu.get_tpu_info()
        cap = getattr(info, "vmem_capacity_bytes", None)
        if cap:
            return int(cap)
    except Exception:
        pass
    return default


_VMEM_BYTES = _tpu_vmem_bytes()
# Leave headroom for compiler scratch / semaphores (critical on v7x: 64 MiB/TC).
_VMEM_LIMIT = int(min(_VMEM_BYTES * 3 // 4, 100 * 1024 * 1024))
# Bigger row tiles raise arithmetic intensity per streamed weight byte.
_DEFAULT_TM = 512 if _VMEM_BYTES >= (100 << 20) else 256


# ----------------------------- small helpers -----------------------------

def _round_up(x, m):
    return (x + m - 1) // m * m


def _pick_tile(dim, want, align):
    """Tile size (aligned, <= want unless dim is tiny) and the padded extent."""
    t = min(want, _round_up(dim, align))
    return t, _round_up(dim, t)


def _pad_to(a, shape):
    if tuple(a.shape) == tuple(shape):
        return a
    return jnp.pad(a, [(0, s - d) for d, s in zip(a.shape, shape)])


def _erf(x):
    # Abramowitz & Stegun 7.1.26 (|err| < 1.5e-7): exact-GELU semantics using
    # only exp / div, which always lower inside Mosaic.
    a1, a2, a3, a4, a5 = (0.254829592, -0.284496736, 1.421413741,
                          -1.453152027, 1.061405429)
    p = 0.3275911
    ax = jnp.abs(x)
    t = 1.0 / (1.0 + p * ax)
    poly = ((((a5 * t + a4) * t + a3) * t + a2) * t + a1) * t
    y = 1.0 - poly * jnp.exp(-(ax * ax))
    return jnp.where(x < 0.0, -y, y)


def _gelu(x):
    # nn.GELU() default: exact erf formulation.
    return 0.5 * x * (1.0 + _erf(x * 0.7071067811865476))


# ----------------------------- fused (LN) + Linear (+GELU) (+residual) -----------------------------

def _fused_linear_kernel(*refs, has_ln, has_res, use_gelu):
    it = iter(refs)
    x_ref = next(it)
    g_ref = next(it) if has_ln else None
    be_ref = next(it) if has_ln else None
    r_ref = next(it) if has_res else None
    w_ref = next(it)
    b_ref = next(it)
    o_ref = next(it)
    xs_ref = next(it)          # (tm, K) bf16 scratch: LN'd / cast x, reused over j

    # Hoisted LN + bf16 cast: compute once per row tile (j == 0), reuse for
    # every output-column tile.  The j grid axis is "arbitrary" so the scratch
    # persists across it.
    @pl.when(pl.program_id(1) == 0)
    def _prep():
        xv = x_ref[...].astype(jnp.float32)
        if has_ln:
            g = g_ref[...].astype(jnp.float32)
            be = be_ref[...].astype(jnp.float32)
            mu = jnp.mean(xv, axis=-1, keepdims=True)
            var = jnp.mean(jnp.square(xv - mu), axis=-1, keepdims=True)
            xv = (xv - mu) * lax.rsqrt(var + 1e-5) * g + be
        xs_ref[...] = xv.astype(jnp.bfloat16)

    # bf16 MXU inputs, f32 accumulation.
    y = jnp.dot(xs_ref[...], w_ref[...].astype(jnp.bfloat16),
                preferred_element_type=jnp.float32)
    y = y + b_ref[...].astype(jnp.float32)
    if use_gelu:
        y = _gelu(y)
    if has_res:
        y = y + r_ref[...].astype(jnp.float32)
    o_ref[...] = y.astype(o_ref.dtype)


def fused_linear(x, w, b, *, gamma=None, beta=None, residual=None,
                 use_gelu=False, out_dtype=jnp.float32,
                 tile_m=None, tile_n=256):
    """y = [LayerNorm](x) @ w + b [GELU] [+ residual], tiled over rows / out-cols."""
    M, K = x.shape
    Kw, N = w.shape
    assert K == Kw
    has_ln = gamma is not None
    has_res = residual is not None

    tm, Mp = _pick_tile(M, tile_m or _DEFAULT_TM, 8)
    tn, Np = _pick_tile(N, tile_n, 128)

    xp = _pad_to(x, (Mp, K))
    wp = _pad_to(w, (K, Np))
    bp = _pad_to(b, (1, Np))

    args = [xp]
    in_specs = [pl.BlockSpec((tm, K), lambda i, j: (i, 0))]
    if has_ln:
        args += [gamma, beta]
        in_specs += [pl.BlockSpec((1, K), lambda i, j: (0, 0)),
                     pl.BlockSpec((1, K), lambda i, j: (0, 0))]
    if has_res:
        args.append(_pad_to(residual, (Mp, Np)))
        in_specs.append(pl.BlockSpec((tm, tn), lambda i, j: (i, j)))
    args += [wp, bp]
    in_specs += [pl.BlockSpec((K, tn), lambda i, j: (0, j)),    # streamed weight slab
                 pl.BlockSpec((1, tn), lambda i, j: (0, j))]

    bytes_accessed = (xp.size * xp.dtype.itemsize
                      + wp.size * wp.dtype.itemsize
                      + bp.size * bp.dtype.itemsize
                      + Mp * Np * jnp.dtype(out_dtype).itemsize
                      + (Mp * Np * 4 if has_res else 0)
                      + (2 * K * 4 if has_ln else 0))
    cost = pl.CostEstimate(flops=int(2 * Mp * K * Np),
                           transcendentals=int(Mp * Np) if use_gelu else 0,
                           bytes_accessed=int(bytes_accessed))

    kernel = functools.partial(_fused_linear_kernel, has_ln=has_ln,
                               has_res=has_res, use_gelu=use_gelu)
    out = pl.pallas_call(
        kernel,
        out_shape=jax.ShapeDtypeStruct((Mp, Np), out_dtype),
        grid=(Mp // tm, Np // tn),
        in_specs=in_specs,
        out_specs=pl.BlockSpec((tm, tn), lambda i, j: (i, j)),
        scratch_shapes=[pltpu.VMEM((tm, K), jnp.bfloat16)],
        compiler_params=pltpu.CompilerParams(
            dimension_semantics=("parallel", "arbitrary"),
            vmem_limit_bytes=_VMEM_LIMIT),
        cost_estimate=cost,
    )(*args)
    if (Mp, Np) != (M, N):
        out = out[:M, :N]
    return out


# ----------------------------- flash-style causal attention -----------------------------

def _flash_attn_kernel(q_ref, k_ref, v_ref, o_ref, m_sc, l_sc, acc_sc,
                       *, scale, tq, tk, n_heads, head_dim):
    qi = pl.program_id(1)
    ki = pl.program_id(2)
    n_kv = pl.num_programs(2)
    q_first = qi * tq
    q_last = qi * tq + (tq - 1)
    k_first = ki * tk
    k_last = ki * tk + (tk - 1)

    @pl.when(ki == 0)
    def _init():
        m_sc[...] = jnp.full(m_sc.shape, -jnp.inf, dtype=m_sc.dtype)
        l_sc[...] = jnp.zeros(l_sc.shape, dtype=l_sc.dtype)
        acc_sc[...] = jnp.zeros(acc_sc.shape, dtype=acc_sc.dtype)

    def _scores():
        # (H, tq, dh) x (H, tk, dh) -> (H, tq, tk); no swapaxes: input layout
        # is already head-major.
        q = (q_ref[0].astype(jnp.float32) * scale).astype(jnp.bfloat16)
        k = k_ref[0].astype(jnp.bfloat16)
        return jnp.einsum('hqd,hkd->hqk', q, k,
                          preferred_element_type=jnp.float32)

    def _update(s):
        v = v_ref[0].astype(jnp.bfloat16)
        m_prev = m_sc[...]
        m_new = jnp.maximum(m_prev, jnp.max(s, axis=-1, keepdims=True))
        p = jnp.exp(s - m_new)
        alpha = jnp.exp(m_prev - m_new)
        l_sc[...] = alpha * l_sc[...] + jnp.sum(p, axis=-1, keepdims=True)
        acc_sc[...] = alpha * acc_sc[...] + jnp.einsum(
            'hqk,hkd->hqd', p.astype(jnp.bfloat16), v,
            preferred_element_type=jnp.float32)
        m_sc[...] = m_new

    # Tiles entirely below the causal diagonal: no mask math at all.
    @pl.when(k_last <= q_first)
    def _full_tile():
        _update(_scores())

    # Diagonal tiles: build and apply the causal mask.
    @pl.when(jnp.logical_and(k_last > q_first, k_first <= q_last))
    def _diag_tile():
        s = _scores()
        row = q_first + lax.broadcasted_iota(jnp.int32, (tq, tk), 0)
        col = k_first + lax.broadcasted_iota(jnp.int32, (tq, tk), 1)
        s = jnp.where((col <= row)[None, :, :], s, jnp.float32(-1e30))
        _update(s)

    # (tiles with k_first > q_last are skipped; their k/v DMA is also elided
    #  by the clamped index_map in the wrapper.)

    @pl.when(ki == n_kv - 1)
    def _final():
        inv_l = pl.reciprocal(l_sc[...], approx=True)      # EUP, not a VPU divide
        out = acc_sc[...] * inv_l                          # (H, tq, dh) f32
        # Lane-dense (tq, H*dh) output slab via static per-head column slices.
        for h in range(n_heads):
            o_ref[0, :, h * head_dim:(h + 1) * head_dim] = out[h].astype(o_ref.dtype)


def flash_attention(q, k, v, *, tile_t=256, out_dtype=jnp.bfloat16):
    """Causal MHA.  q, k, v: (B, H, T, dh) -> (B, T, H*dh)."""
    B, H, T, dh = q.shape
    D = H * dh
    t, Tp = _pick_tile(T, tile_t, 8)
    if Tp != T:
        pad = [(0, 0), (0, 0), (0, Tp - T), (0, 0)]
        q, k, v = jnp.pad(q, pad), jnp.pad(k, pad), jnp.pad(v, pad)
    n_t = Tp // t
    scale = 1.0 / math.sqrt(dh)

    def q_map(b, i, j):
        return (b, 0, i, 0)

    def kv_map(b, i, j):
        # tq == tk, so the last causally-visible kv block for q-tile i is i.
        # Clamping makes fully-masked steps alias the previous block index so
        # Pallas elides their DMA.
        return (b, 0, jnp.minimum(j, i), 0)

    cost = pl.CostEstimate(
        flops=int(2 * B * H * Tp * Tp * dh),          # ~causal-halved qk + pv
        transcendentals=int(B * H * Tp * Tp // 2),
        bytes_accessed=int(3 * q.size * q.dtype.itemsize
                           + B * Tp * D * jnp.dtype(out_dtype).itemsize))

    kernel = functools.partial(_flash_attn_kernel, scale=scale, tq=t, tk=t,
                               n_heads=H, head_dim=dh)
    out = pl.pallas_call(
        kernel,
        out_shape=jax.ShapeDtypeStruct((B, Tp, D), out_dtype),
        grid=(B, n_t, n_t),
        in_specs=[
            pl.BlockSpec((1, H, t, dh), q_map),
            pl.BlockSpec((1, H, t, dh), kv_map),
            pl.BlockSpec((1, H, t, dh), kv_map),
        ],
        out_specs=pl.BlockSpec((1, t, D), lambda b, i, j: (b, i, 0)),
        scratch_shapes=[
            pltpu.VMEM((H, t, 1), jnp.float32),    # running max m
            pltpu.VMEM((H, t, 1), jnp.float32),    # running denom l
            pltpu.VMEM((H, t, dh), jnp.float32),   # output accumulator
        ],
        compiler_params=pltpu.CompilerParams(
            dimension_semantics=("parallel", "parallel", "arbitrary"),
            vmem_limit_bytes=_VMEM_LIMIT),
        cost_estimate=cost,
    )(q, k, v)
    if Tp != T:
        out = out[:, :T, :]
    return out


# ----------------------------- parameter init + full forward -----------------------------

def init_params(key, n_vocab, max_seq, D, n_layers):
    keys = iter(jax.random.split(key, 3 + 4 * n_layers))
    s = 0.02

    def w(shape, dtype=jnp.bfloat16):
        return (jax.random.normal(next(keys), shape, jnp.float32) * s).astype(dtype)

    params = {
        'tok_emb': w((n_vocab, D), jnp.float32),
        'pos_emb': w((max_seq, D), jnp.float32),
        'wf': w((D, n_vocab)),
        'bf': jnp.zeros((1, n_vocab), jnp.float32),
        'ln_f_g': jnp.ones((1, D), jnp.float32),
        'ln_f_b': jnp.zeros((1, D), jnp.float32),
        'blocks': [],
    }
    for _ in range(n_layers):
        params['blocks'].append({
            'ln1_g': jnp.ones((1, D), jnp.float32),
            'ln1_b': jnp.zeros((1, D), jnp.float32),
            'wqkv': w((D, 3 * D)),
            'bqkv': jnp.zeros((1, 3 * D), jnp.float32),
            'wo': w((D, D)),
            'bo': jnp.zeros((1, D), jnp.float32),
            'ln2_g': jnp.ones((1, D), jnp.float32),
            'ln2_b': jnp.zeros((1, D), jnp.float32),
            'w1': w((D, 4 * D)),
            'b1': jnp.zeros((1, 4 * D), jnp.float32),
            'w2': w((4 * D, D)),
            'b2': jnp.zeros((1, D), jnp.float32),
        })
    return params


@functools.partial(jax.jit, static_argnames=("n_heads",))
def gpt_forward(tokens, params, *, n_heads):
    B, T = tokens.shape
    D = params['tok_emb'].shape[1]
    H = n_heads
    dh = D // H

    # Token + positional embedding (gather is glue).  Dropout = identity (eval).
    x = params['tok_emb'][tokens] + params['pos_emb'][:T][None, :, :]    # (B,T,D)
    xf = x.reshape(B * T, D).astype(jnp.float32)                         # f32 residual stream

    for blk in params['blocks']:
        # LN1 fused into the QKV projection; qkv emitted in bf16.
        qkv = fused_linear(xf, blk['wqkv'], blk['bqkv'],
                           gamma=blk['ln1_g'], beta=blk['ln1_b'],
                           out_dtype=jnp.bfloat16)
        qkv = qkv.reshape(B, T, 3, H, dh).transpose(2, 0, 3, 1, 4)       # (3,B,H,T,dh)
        attn = flash_attention(qkv[0], qkv[1], qkv[2])                   # (B,T,D) bf16
        # Output projection + residual 1 (back to f32 residual stream).
        xf = fused_linear(attn.reshape(B * T, D), blk['wo'], blk['bo'],
                          residual=xf, out_dtype=jnp.float32)
        # LN2 + FFN up + GELU (bf16 hidden), then FFN down + residual 2.
        ff = fused_linear(xf, blk['w1'], blk['b1'],
                          gamma=blk['ln2_g'], beta=blk['ln2_b'],
                          use_gelu=True, out_dtype=jnp.bfloat16)
        xf = fused_linear(ff, blk['w2'], blk['b2'],
                          residual=xf, out_dtype=jnp.float32)

    # Final LN + vocab projection (wf streams through VMEM in lane-dense tiles).
    logits = fused_linear(xf, params['wf'], params['bf'],
                          gamma=params['ln_f_g'], beta=params['ln_f_b'],
                          out_dtype=jnp.float32)
    return logits.reshape(B, T, -1)


# ----------------------------- main -----------------------------

if __name__ == "__main__":
    # Small config consistent with the module's forward.
    n_vocab = 64
    max_seq = 16
    embed_dim = 32
    n_heads = 4
    n_layers = 2
    B, T = 2, 8

    key = jax.random.PRNGKey(0)
    pkey, tkey = jax.random.split(key)
    params = init_params(pkey, n_vocab, max_seq, embed_dim, n_layers)
    tokens = jax.random.randint(tkey, (B, T), 0, n_vocab, dtype=jnp.int32)

    logits = gpt_forward(tokens, params, n_heads=n_heads)
    logits = jax.block_until_ready(logits)
    assert logits.shape == (B, T, n_vocab)
    assert bool(jnp.all(jnp.isfinite(logits)))
    print("KERNEL_OK")
</pallas_src>

<mosaic_0001>
module attributes {stable_mosaic.version = 11 : i64} {
  func.func @_fused_linear_kernel(%arg0: i32, %arg1: i32, %arg2: memref<16x32xf32, #tpu.memory_space<vmem>>, %arg3: memref<1x32xf32, #tpu.memory_space<vmem>>, %arg4: memref<1x32xf32, #tpu.memory_space<vmem>>, %arg5: memref<32x128xbf16, #tpu.memory_space<vmem>>, %arg6: memref<1x128xf32, #tpu.memory_space<vmem>>, %arg7: memref<16x128xbf16, #tpu.memory_space<vmem>>, %arg8: memref<16x32xbf16, #tpu.memory_space<vmem>>) attributes {dimension_semantics = [#tpu.dimension_semantics<parallel>, #tpu.dimension_semantics<arbitrary>], iteration_bounds = array<i64: 1, 1>, scalar_prefetch = 0 : i64, scratch_operands = 1 : i64, tpu.core_type = #tpu.core_type<tc>, window_params = [{transform_indices = @transform_0, window_bounds = array<i64: 16, 32>}, {pipeline_mode = #tpu.pipeline_mode<synchronous>, transform_indices = @transform_1, window_bounds = array<i64: 1, 32>}, {pipeline_mode = #tpu.pipeline_mode<synchronous>, transform_indices = @transform_2, window_bounds = array<i64: 1, 32>}, {transform_indices = @transform_3, window_bounds = array<i64: 32, 128>}, {transform_indices = @transform_4, window_bounds = array<i64: 1, 128>}, {transform_indices = @transform_5, window_bounds = array<i64: 16, 128>}]} {
    %c0_i32 = arith.constant 0 : i32
    %0 = arith.cmpi eq, %arg1, %c0_i32 : i32
    %1 = arith.extui %0 : i1 to i32
    %c0_i32_0 = arith.constant 0 : i32
    %2 = arith.cmpi ne, %1, %c0_i32_0 : i32
    scf.if %2 {
      %c0_8 = arith.constant 0 : index
      %c0_9 = arith.constant 0 : index
      %11 = vector.load %arg2[%c0_8, %c0_9] : memref<16x32xf32, #tpu.memory_space<vmem>>, vector<16x32xf32>
      %c0_10 = arith.constant 0 : index
      %c0_11 = arith.constant 0 : index
      %12 = vector.load %arg3[%c0_10, %c0_11] : memref<1x32xf32, #tpu.memory_space<vmem>>, vector<1x32xf32>
      %c0_12 = arith.constant 0 : index
      %c0_13 = arith.constant 0 : index
      %13 = vector.load %arg4[%c0_12, %c0_13] : memref<1x32xf32, #tpu.memory_space<vmem>>, vector<1x32xf32>
      %cst_14 = arith.constant dense<0.000000e+00> : vector<16xf32>
      %14 = vector.multi_reduction <add>, %11, %cst_14 [1] : vector<16x32xf32> to vector<16xf32>
      %15 = vector.shape_cast %14 : vector<16xf32> to vector<16x1xf32>
      %cst_15 = arith.constant 3.200000e+01 : f32
      %16 = vector.broadcast %cst_15 : f32 to vector<16x1xf32>
      %17 = arith.divf %15, %16 : vector<16x1xf32>
      %18 = vector.broadcast %17 : vector<16x1xf32> to vector<16x32xf32>
      %19 = arith.subf %11, %18 : vector<16x32xf32>
      %20 = arith.mulf %19, %19 : vector<16x32xf32>
      %cst_16 = arith.constant dense<0.000000e+00> : vector<16xf32>
      %21 = vector.multi_reduction <add>, %20, %cst_16 [1] : vector<16x32xf32> to vector<16xf32>
      %22 = vector.shape_cast %21 : vector<16xf32> to vector<16x1xf32>
      %cst_17 = arith.constant 3.200000e+01 : f32
      %23 = vector.broadcast %cst_17 : f32 to vector<16x1xf32>
      %24 = arith.divf %22, %23 : vector<16x1xf32>
      %25 = vector.broadcast %17 : vector<16x1xf32> to vector<16x32xf32>
      %26 = arith.subf %11, %25 : vector<16x32xf32>
      %cst_18 = arith.constant 9.99999974E-6 : f32
      %27 = vector.broadcast %cst_18 : f32 to vector<16x1xf32>
      %28 = arith.addf %24, %27 : vector<16x1xf32>
      %29 = math.rsqrt %28 : vector<16x1xf32>
      %30 = vector.broadcast %29 : vector<16x1xf32> to vector<16x32xf32>
      %31 = arith.mulf %26, %30 : vector<16x32xf32>
      %32 = vector.broadcast %12 : vector<1x32xf32> to vector<16x32xf32>
      %33 = arith.mulf %31, %32 : vector<16x32xf32>
      %34 = vector.broadcast %13 : vector<1x32xf32> to vector<16x32xf32>
      %35 = arith.addf %33, %34 : vector<16x32xf32>
      %36 = arith.truncf %35 : vector<16x32xf32> to vector<16x32xbf16>
      %c0_19 = arith.constant 0 : index
      %c0_20 = arith.constant 0 : index
      %37 = vector.load %arg8[%c0_19, %c0_20] : memref<16x32xbf16, #tpu.memory_space<vmem>>, vector<16x32xbf16>
      tpu.vector_store %arg8[%c0_19, %c0_20], %36 {strides = array<i32>} : memref<16x32xbf16, #tpu.memory_space<vmem>>, vector<16x32xbf16>,
    } else {
    }
    %c0 = arith.constant 0 : index
    %c0_1 = arith.constant 0 : index
    %3 = vector.load %arg8[%c0, %c0_1] : memref<16x32xbf16, #tpu.memory_space<vmem>>, vector<16x32xbf16>
    %c0_2 = arith.constant 0 : index
    %c0_3 = arith.constant 0 : index
    %4 = vector.load %arg5[%c0_2, %c0_3] : memref<32x128xbf16, #tpu.memory_space<vmem>>, vector<32x128xbf16>
    %cst = arith.constant dense<0.000000e+00> : vector<16x128xf32>
    %5 = tpu.matmul %3, %4, %cst {dimension_numbers = #tpu.dot_dimension_numbers<[1], [0], [0], [1], [0, 0, 1, 1], [], []>} : vector<16x32xbf16>, vector<32x128xbf16>, vector<16x128xf32> -> vector<16x128xf32>
    %c0_4 = arith.constant 0 : index
    %c0_5 = arith.constant 0 : index
    %6 = vector.load %arg6[%c0_4, %c0_5] : memref<1x128xf32, #tpu.memory_space<vmem>>, vector<1x128xf32>
    %7 = vector.broadcast %6 : vector<1x128xf32> to vector<16x128xf32>
    %8 = arith.addf %5, %7 : vector<16x128xf32>
    %9 = arith.truncf %8 : vector<16x128xf32> to vector<16x128xbf16>
    %c0_6 = arith.constant 0 : index
    %c0_7 = arith.constant 0 : index
    %10 = vector.load %arg7[%c0_6, %c0_7] : memref<16x128xbf16, #tpu.memory_space<vmem>>, vector<16x128xbf16>
    tpu.vector_store %arg7[%c0_6, %c0_7], %9 {strides = array<i32>} : memref<16x128xbf16, #tpu.memory_space<vmem>>, vector<16x128xbf16>,
    return
  }
  func.func @transform_0(%arg0: i32, %arg1: i32) -> (i32, i32) {
    %c0_i32 = arith.constant 0 : i32
    %c0_i32_0 = arith.constant 0 : i32
    return %arg0, %c0_i32 : i32, i32
  }
  func.func @transform_1(%arg0: i32, %arg1: i32) -> (i32, i32) {
    %c0_i32 = arith.constant 0 : i32
    %c0_i32_0 = arith.constant 0 : i32
    %c0_i32_1 = arith.constant 0 : i32
    return %c0_i32, %c0_i32_0 : i32, i32
  }
  func.func @transform_2(%arg0: i32, %arg1: i32) -> (i32, i32) {
    %c0_i32 = arith.constant 0 : i32
    %c0_i32_0 = arith.constant 0 : i32
    %c0_i32_1 = arith.constant 0 : i32
    return %c0_i32, %c0_i32_0 : i32, i32
  }
  func.func @transform_3(%arg0: i32, %arg1: i32) -> (i32, i32) {
    %c0_i32 = arith.constant 0 : i32
    %c0_i32_0 = arith.constant 0 : i32
    return %c0_i32, %arg1 : i32, i32
  }
  func.func @transform_4(%arg0: i32, %arg1: i32) -> (i32, i32) {
    %c0_i32 = arith.constant 0 : i32
    %c0_i32_0 = arith.constant 0 : i32
    return %c0_i32, %arg1 : i32, i32
  }
  func.func @transform_5(%arg0: i32, %arg1: i32) -> (i32, i32) {
    %c0_i32 = arith.constant 0 : i32
    return %arg0, %arg1 : i32, i32
  }
}

module attributes {stable_mosaic.version = 11 : i64} {
  func.func @_flash_attn_kernel(%arg0: i32, %arg1: i32, %arg2: i32, %arg3: memref<1x4x8x8xbf16, #tpu.memory_space<vmem>>, %arg4: memref<1x4x8x8xbf16, #tpu.memory_space<vmem>>, %arg5: memref<1x4x8x8xbf16, #tpu.memory_space<vmem>>, %arg6: memref<1x8x32xbf16, #tpu.memory_space<vmem>>, %arg7: memref<4x8x1xf32, #tpu.memory_space<vmem>>, %arg8: memref<4x8x1xf32, #tpu.memory_space<vmem>>, %arg9: memref<4x8x8xf32, #tpu.memory_space<vmem>>) attributes {dimension_semantics = [#tpu.dimension_semantics<parallel>, #tpu.dimension_semantics<parallel>, #tpu.dimension_semantics<arbitrary>], iteration_bounds = array<i64: 2, 1, 1>, scalar_prefetch = 0 : i64, scratch_operands = 3 : i64, tpu.core_type = #tpu.core_type<tc>, window_params = [{transform_indices = @transform_0, window_bounds = array<i64: 1, 4, 8, 8>}, {transform_indices = @transform_1, window_bounds = array<i64: 1, 4, 8, 8>}, {transform_indices = @transform_2, window_bounds = array<i64: 1, 4, 8, 8>}, {transform_indices = @transform_3, window_bounds = array<i64: 1, 8, 32>}]} {
    %c8_i32 = arith.constant 8 : i32
    %0 = arith.muli %arg1, %c8_i32 : i32
    %c8_i32_0 = arith.constant 8 : i32
    %1 = arith.muli %arg1, %c8_i32_0 : i32
    %c7_i32 = arith.constant 7 : i32
    %2 = arith.addi %1, %c7_i32 : i32
    %c8_i32_1 = arith.constant 8 : i32
    %3 = arith.muli %arg2, %c8_i32_1 : i32
    %c8_i32_2 = arith.constant 8 : i32
    %4 = arith.muli %arg2, %c8_i32_2 : i32
    %c7_i32_3 = arith.constant 7 : i32
    %5 = arith.addi %4, %c7_i32_3 : i32
    %c0_i32 = arith.constant 0 : i32
    %6 = arith.cmpi eq, %arg2, %c0_i32 : i32
    %7 = arith.extui %6 : i1 to i32
    %c0_i32_4 = arith.constant 0 : i32
    %8 = arith.cmpi ne, %7, %c0_i32_4 : i32
    scf.if %8 {
      %cst = arith.constant 0xFF800000 : f32
      %20 = vector.broadcast %cst : f32 to vector<4x8x1xf32>
      %c0 = arith.constant 0 : index
      %c0_9 = arith.constant 0 : index
      %c0_10 = arith.constant 0 : index
      %21 = vector.load %arg7[%c0, %c0_9, %c0_10] : memref<4x8x1xf32, #tpu.memory_space<vmem>>, vector<4x8x1xf32>
      tpu.vector_store %arg7[%c0, %c0_9, %c0_10], %20 {strides = array<i32>} : memref<4x8x1xf32, #tpu.memory_space<vmem>>, vector<4x8x1xf32>,
      %cst_11 = arith.constant 0.000000e+00 : f32
      %22 = vector.broadcast %cst_11 : f32 to vector<4x8x1xf32>
      %c0_12 = arith.constant 0 : index
      %c0_13 = arith.constant 0 : index
      %c0_14 = arith.constant 0 : index
      %23 = vector.load %arg8[%c0_12, %c0_13, %c0_14] : memref<4x8x1xf32, #tpu.memory_space<vmem>>, vector<4x8x1xf32>
      tpu.vector_store %arg8[%c0_12, %c0_13, %c0_14], %22 {strides = array<i32>} : memref<4x8x1xf32, #tpu.memory_space<vmem>>, vector<4x8x1xf32>,
      %cst_15 = arith.constant 0.000000e+00 : f32
      %24 = vector.broadcast %cst_15 : f32 to vector<4x8x8xf32>
      %c0_16 = arith.constant 0 : index
      %c0_17 = arith.constant 0 : index
      %c0_18 = arith.constant 0 : index
      %25 = vector.load %arg9[%c0_16, %c0_17, %c0_18] : memref<4x8x8xf32, #tpu.memory_space<vmem>>, vector<4x8x8xf32>
      tpu.vector_store %arg9[%c0_16, %c0_17, %c0_18], %24 {strides = array<i32>} : memref<4x8x8xf32, #tpu.memory_space<vmem>>, vector<4x8x8xf32>,
    } else {
    }
    %9 = arith.cmpi sle, %5, %0 : i32
    %10 = arith.extui %9 : i1 to i32
    %c0_i32_5 = arith.constant 0 : i32
    %11 = arith.cmpi ne, %10, %c0_i32_5 : i32
    scf.if %11 {
      %c0 = arith.constant 0 : index
      %c0_9 = arith.constant 0 : index
      %c0_10 = arith.constant 0 : index
      %c0_11 = arith.constant 0 : index
      %20 = vector.load %arg3[%c0, %c0_9, %c0_10, %c0_11] : memref<1x4x8x8xbf16, #tpu.memory_space<vmem>>, vector<1x4x8x8xbf16>
      %21 = vector.shape_cast %20 : vector<1x4x8x8xbf16> to vector<4x8x8xbf16>
      %22 = arith.extf %21 : vector<4x8x8xbf16> to vector<4x8x8xf32>
      %cst = arith.constant 0.353553385 : f32
      %23 = vector.broadcast %cst : f32 to vector<4x8x8xf32>
      %24 = arith.mulf %22, %23 : vector<4x8x8xf32>
      %25 = arith.truncf %24 : vector<4x8x8xf32> to vector<4x8x8xbf16>
      %c0_12 = arith.constant 0 : index
      %c0_13 = arith.constant 0 : index
      %c0_14 = arith.constant 0 : index
      %c0_15 = arith.constant 0 : index
      %26 = vector.load %arg4[%c0_12, %c0_13, %c0_14, %c0_15] : memref<1x4x8x8xbf16, #tpu.memory_space<vmem>>, vector<1x4x8x8xbf16>
      %27 = vector.shape_cast %26 : vector<1x4x8x8xbf16> to vector<4x8x8xbf16>
      "tpu.trace_start"() <{level = 10 : i32, message = "hqd,hkd->hqk"}> : () -> ()
      %cst_16 = arith.constant dense<0.000000e+00> : vector<4x8x8xf32>
      %28 = tpu.matmul %25, %27, %cst_16 {dimension_numbers = #tpu.dot_dimension_numbers<[2], [2], [1], [1], [0, 0, 0, 1, 1, 1], [0], [0]>} : vector<4x8x8xbf16>, vector<4x8x8xbf16>, vector<4x8x8xf32> -> vector<4x8x8xf32>
      "tpu.trace_stop"() : () -> ()
      %c0_17 = arith.constant 0 : index
      %c0_18 = arith.constant 0 : index
      %c0_19 = arith.constant 0 : index
      %c0_20 = arith.constant 0 : index
      %29 = vector.load %arg5[%c0_17, %c0_18, %c0_19, %c0_20] : memref<1x4x8x8xbf16, #tpu.memory_space<vmem>>, vector<1x4x8x8xbf16>
      %30 = vector.shape_cast %29 : vector<1x4x8x8xbf16> to vector<4x8x8xbf16>
      %c0_21 = arith.constant 0 : index
      %c0_22 = arith.constant 0 : index
      %c0_23 = arith.constant 0 : index
      %31 = vector.load %arg7[%c0_21, %c0_22, %c0_23] : memref<4x8x1xf32, #tpu.memory_space<vmem>>, vector<4x8x1xf32>
      %cst_24 = arith.constant dense<0xFF800000> : vector<4x8xf32>
      %32 = vector.multi_reduction <maximumf>, %28, %cst_24 [2] : vector<4x8x8xf32> to vector<4x8xf32>
      %33 = vector.shape_cast %32 : vector<4x8xf32> to vector<4x8x1xf32>
      %34 = arith.maximumf %31, %33 : vector<4x8x1xf32>
      %35 = vector.broadcast %34 : vector<4x8x1xf32> to vector<4x8x8xf32>
      %36 = arith.subf %28, %35 : vector<4x8x8xf32>
      %37 = math.exp %36 : vector<4x8x8xf32>
      %38 = arith.subf %31, %34 : vector<4x8x1xf32>
      %39 = math.exp %38 : vector<4x8x1xf32>
      %c0_25 = arith.constant 0 : index
      %c0_26 = arith.constant 0 : index
      %c0_27 = arith.constant 0 : index
      %40 = vector.load %arg8[%c0_25, %c0_26, %c0_27] : memref<4x8x1xf32, #tpu.memory_space<vmem>>, vector<4x8x1xf32>
      %41 = arith.mulf %39, %40 : vector<4x8x1xf32>
      %cst_28 = arith.constant dense<0.000000e+00> : vector<4x8xf32>
      %42 = vector.multi_reduction <add>, %37, %cst_28 [2] : vector<4x8x8xf32> to vector<4x8xf32>
      %43 = vector.shape_cast %42 : vector<4x8xf32> to vector<4x8x1xf32>
      %44 = arith.addf %41, %43 : vector<4x8x1xf32>
      %c0_29 = arith.constant 0 : index
      %c0_30 = arith.constant 0 : index
      %c0_31 = arith.constant 0 : index
      %45 = vector.load %arg8[%c0_29, %c0_30, %c0_31] : memref<4x8x1xf32, #tpu.memory_space<vmem>>, vector<4x8x1xf32>
      tpu.vector_store %arg8[%c0_29, %c0_30, %c0_31], %44 {strides = array<i32>} : memref<4x8x1xf32, #tpu.memory_space<vmem>>, vector<4x8x1xf32>,
      %c0_32 = arith.constant 0 : index
      %c0_33 = arith.constant 0 : index
      %c0_34 = arith.constant 0 : index
      %46 = vector.load %arg9[%c0_32, %c0_33, %c0_34] : memref<4x8x8xf32, #tpu.memory_space<vmem>>, vector<4x8x8xf32>
      %47 = vector.broadcast %39 : vector<4x8x1xf32> to vector<4x8x8xf32>
      %48 = arith.mulf %47, %46 : vector<4x8x8xf32>
      %49 = arith.truncf %37 : vector<4x8x8xf32> to vector<4x8x8xbf16>
      "tpu.trace_start"() <{level = 10 : i32, message = "hqk,hkd->hqd"}> : () -> ()
      %cst_35 = arith.constant dense<0.000000e+00> : vector<4x8x8xf32>
      %50 = tpu.matmul %49, %30, %cst_35 {dimension_numbers = #tpu.dot_dimension_numbers<[2], [1], [1], [2], [0, 0, 0, 1, 1, 2], [0], [0]>} : vector<4x8x8xbf16>, vector<4x8x8xbf16>, vector<4x8x8xf32> -> vector<4x8x8xf32>
      "tpu.trace_stop"() : () -> ()
      %51 = arith.addf %48, %50 : vector<4x8x8xf32>
      %c0_36 = arith.constant 0 : index
      %c0_37 = arith.constant 0 : index
      %c0_38 = arith.constant 0 : index
      %52 = vector.load %arg9[%c0_36, %c0_37, %c0_38] : memref<4x8x8xf32, #tpu.memory_space<vmem>>, vector<4x8x8xf32>
      tpu.vector_store %arg9[%c0_36, %c0_37, %c0_38], %51 {strides = array<i32>} : memref<4x8x8xf32, #tpu.memory_space<vmem>>, vector<4x8x8xf32>,
      %c0_39 = arith.constant 0 : index
      %c0_40 = arith.constant 0 : index
      %c0_41 = arith.constant 0 : index
      %53 = vector.load %arg7[%c0_39, %c0_40, %c0_41] : memref<4x8x1xf32, #tpu.memory_space<vmem>>, vector<4x8x1xf32>
      tpu.vector_store %arg7[%c0_39, %c0_40, %c0_41], %34 {strides = array<i32>} : memref<4x8x1xf32, #tpu.memory_space<vmem>>, vector<4x8x1xf32>,
    } else {
    }
    %12 = arith.cmpi sgt, %5, %0 : i32
    %13 = arith.cmpi sle, %3, %2 : i32
    %14 = arith.andi %12, %13 : i1
    %15 = arith.extui %14 : i1 to i32
    %c0_i32_6 = arith.constant 0 : i32
    %16 = arith.cmpi ne, %15, %c0_i32_6 : i32
    scf.if %16 {
      %c0 = arith.constant 0 : index
      %c0_9 = arith.constant 0 : index
      %c0_10 = arith.constant 0 : index
      %c0_11 = arith.constant 0 : index
      %20 = vector.load %arg3[%c0, %c0_9, %c0_10, %c0_11] : memref<1x4x8x8xbf16, #tpu.memory_space<vmem>>, vector<1x4x8x8xbf16>
      %21 = vector.shape_cast %20 : vector<1x4x8x8xbf16> to vector<4x8x8xbf16>
      %22 = arith.extf %21 : vector<4x8x8xbf16> to vector<4x8x8xf32>
      %cst = arith.constant 0.353553385 : f32
      %23 = vector.broadcast %cst : f32 to vector<4x8x8xf32>
      %24 = arith.mulf %22, %23 : vector<4x8x8xf32>
      %25 = arith.truncf %24 : vector<4x8x8xf32> to vector<4x8x8xbf16>
      %c0_12 = arith.constant 0 : index
      %c0_13 = arith.constant 0 : index
      %c0_14 = arith.constant 0 : index
      %c0_15 = arith.constant 0 : index
      %26 = vector.load %arg4[%c0_12, %c0_13, %c0_14, %c0_15] : memref<1x4x8x8xbf16, #tpu.memory_space<vmem>>, vector<1x4x8x8xbf16>
      %27 = vector.shape_cast %26 : vector<1x4x8x8xbf16> to vector<4x8x8xbf16>
      "tpu.trace_start"() <{level = 10 : i32, message = "hqd,hkd->hqk"}> : () -> ()
      %cst_16 = arith.constant dense<0.000000e+00> : vector<4x8x8xf32>
      %28 = tpu.matmul %25, %27, %cst_16 {dimension_numbers = #tpu.dot_dimension_numbers<[2], [2], [1], [1], [0, 0, 0, 1, 1, 1], [0], [0]>} : vector<4x8x8xbf16>, vector<4x8x8xbf16>, vector<4x8x8xf32> -> vector<4x8x8xf32>
      "tpu.trace_stop"() : () -> ()
      %29 = tpu.iota {dimensions = array<i32: 0>} : vector<8x8xi32>
      %30 = vector.broadcast %0 : i32 to vector<8x8xi32>
      %31 = arith.addi %30, %29 : vector<8x8xi32>
      %32 = tpu.iota {dimensions = array<i32: 1>} : vector<8x8xi32>
      %33 = vector.broadcast %3 : i32 to vector<8x8xi32>
      %34 = arith.addi %33, %32 : vector<8x8xi32>
      %35 = arith.cmpi sle, %34, %31 : vector<8x8xi32>
      %36 = vector.shape_cast %35 : vector<8x8xi1> to vector<1x8x8xi1>
      %cst_17 = arith.constant -1.000000e+30 : f32
      %37 = vector.shape_cast %36 : vector<1x8x8xi1> to vector<1x8x8xi1>
      %38 = vector.broadcast %37 : vector<1x8x8xi1> to vector<4x8x8xi1>
      %39 = vector.broadcast %cst_17 : f32 to vector<4x8x8xf32>
      %40 = arith.select %38, %28, %39 : vector<4x8x8xi1>, vector<4x8x8xf32>
      %c0_18 = arith.constant 0 : index
      %c0_19 = arith.constant 0 : index
      %c0_20 = arith.constant 0 : index
      %c0_21 = arith.constant 0 : index
      %41 = vector.load %arg5[%c0_18, %c0_19, %c0_20, %c0_21] : memref<1x4x8x8xbf16, #tpu.memory_space<vmem>>, vector<1x4x8x8xbf16>
      %42 = vector.shape_cast %41 : vector<1x4x8x8xbf16> to vector<4x8x8xbf16>
      %c0_22 = arith.constant 0 : index
      %c0_23 = arith.constant 0 : index
      %c0_24 = arith.constant 0 : index
      %43 = vector.load %arg7[%c0_22, %c0_23, %c0_24] : memref<4x8x1xf32, #tpu.memory_space<vmem>>, vector<4x8x1xf32>
      %cst_25 = arith.constant dense<0xFF800000> : vector<4x8xf32>
      %44 = vector.multi_reduction <maximumf>, %40, %cst_25 [2] : vector<4x8x8xf32> to vector<4x8xf32>
      %45 = vector.shape_cast %44 : vector<4x8xf32> to vector<4x8x1xf32>
      %46 = arith.maximumf %43, %45 : vector<4x8x1xf32>
      %47 = vector.broadcast %46 : vector<4x8x1xf32> to vector<4x8x8xf32>
      %48 = arith.subf %40, %47 : vector<4x8x8xf32>
      %49 = math.exp %48 : vector<4x8x8xf32>
      %50 = arith.subf %43, %46 : vector<4x8x1xf32>
      %51 = math.exp %50 : vector<4x8x1xf32>
      %c0_26 = arith.constant 0 : index
      %c0_27 = arith.constant 0 : index
      %c0_28 = arith.constant 0 : index
      %52 = vector.load %arg8[%c0_26, %c0_27, %c0_28] : memref<4x8x1xf32, #tpu.memory_space<vmem>>, vector<4x8x1xf32>
      %53 = arith.mulf %51, %52 : vector<4x8x1xf32>
      %cst_29 = arith.constant dense<0.000000e+00> : vector<4x8xf32>
      %54 = vector.multi_reduction <add>, %49, %cst_29 [2] : vector<4x8x8xf32> to vector<4x8xf32>
      %55 = vector.shape_cast %54 : vector<4x8xf32> to vector<4x8x1xf32>
      %56 = arith.addf %53, %55 : vector<4x8x1xf32>
      %c0_30 = arith.constant 0 : index
      %c0_31 = arith.constant 0 : index
      %c0_32 = arith.constant 0 : index
      %57 = vector.load %arg8[%c0_30, %c0_31, %c0_32] : memref<4x8x1xf32, #tpu.memory_space<vmem>>, vector<4x8x1xf32>
      tpu.vector_store %arg8[%c0_30, %c0_31, %c0_32], %56 {strides = array<i32>} : memref<4x8x1xf32, #tpu.memory_space<vmem>>, vector<4x8x1xf32>,
      %c0_33 = arith.constant 0 : index
      %c0_34 = arith.constant 0 : index
      %c0_35 = arith.constant 0 : index
      %58 = vector.load %arg9[%c0_33, %c0_34, %c0_35] : memref<4x8x8xf32, #tpu.memory_space<vmem>>, vector<4x8x8xf32>
      %59 = vector.broadcast %51 : vector<4x8x1xf32> to vector<4x8x8xf32>
      %60 = arith.mulf %59, %58 : vector<4x8x8xf32>
      %61 = arith.truncf %49 : vector<4x8x8xf32> to vector<4x8x8xbf16>
      "tpu.trace_start"() <{level = 10 : i32, message = "hqk,hkd->hqd"}> : () -> ()
      %cst_36 = arith.constant dense<0.000000e+00> : vector<4x8x8xf32>
      %62 = tpu.matmul %61, %42, %cst_36 {dimension_numbers = #tpu.dot_dimension_numbers<[2], [1], [1], [2], [0, 0, 0, 1, 1, 2], [0], [0]>} : vector<4x8x8xbf16>, vector<4x8x8xbf16>, vector<4x8x8xf32> -> vector<4x8x8xf32>
      "tpu.trace_stop"() : () -> ()
      %63 = arith.addf %60, %62 : vector<4x8x8xf32>
      %c0_37 = arith.constant 0 : index
      %c0_38 = arith.constant 0 : index
      %c0_39 = arith.constant 0 : index
      %64 = vector.load %arg9[%c0_37, %c0_38, %c0_39] : memref<4x8x8xf32, #tpu.memory_space<vmem>>, vector<4x8x8xf32>
      tpu.vector_store %arg9[%c0_37, %c0_38, %c0_39], %63 {strides = array<i32>} : memref<4x8x8xf32, #tpu.memory_space<vmem>>, vector<4x8x8xf32>,
      %c0_40 = arith.constant 0 : index
      %c0_41 = arith.constant 0 : index
      %c0_42 = arith.constant 0 : index
      %65 = vector.load %arg7[%c0_40, %c0_41, %c0_42] : memref<4x8x1xf32, #tpu.memory_space<vmem>>, vector<4x8x1xf32>
      tpu.vector_store %arg7[%c0_40, %c0_41, %c0_42], %46 {strides = array<i32>} : memref<4x8x1xf32, #tpu.memory_space<vmem>>, vector<4x8x1xf32>,
    } else {
    }
    %c0_i32_7 = arith.constant 0 : i32
    %17 = arith.cmpi eq, %arg2, %c0_i32_7 : i32
    %18 = arith.extui %17 : i1 to i32
    %c0_i32_8 = arith.constant 0 : i32
    %19 = arith.cmpi ne, %18, %c0_i32_8 : i32
    scf.if %19 {
      %c0 = arith.constant 0 : index
      %c0_9 = arith.constant 0 : index
      %c0_10 = arith.constant 0 : index
      %20 = vector.load %arg8[%c0, %c0_9, %c0_10] : memref<4x8x1xf32, #tpu.memory_space<vmem>>, vector<4x8x1xf32>
      %21 = tpu.reciprocal %20 {approx = true} : vector<4x8x1xf32> -> vector<4x8x1xf32>
      %c0_11 = arith.constant 0 : index
      %c0_12 = arith.constant 0 : index
      %c0_13 = arith.constant 0 : index
      %22 = vector.load %arg9[%c0_11, %c0_12, %c0_13] : memref<4x8x8xf32, #tpu.memory_space<vmem>>, vector<4x8x8xf32>
      %23 = vector.broadcast %21 : vector<4x8x1xf32> to vector<4x8x8xf32>
      %24 = arith.mulf %22, %23 : vector<4x8x8xf32>
      %25 = vector.extract_strided_slice %24 {offsets = [0, 0, 0], sizes = [1, 8, 8], strides = [1, 1, 1]} : vector<4x8x8xf32> to vector<1x8x8xf32>
      %26 = vector.shape_cast %25 : vector<1x8x8xf32> to vector<8x8xf32>
      %27 = arith.truncf %26 : vector<8x8xf32> to vector<8x8xbf16>
      %c0_14 = arith.constant 0 : index
      %c0_15 = arith.constant 0 : index
      %c0_16 = arith.constant 0 : index
      %28 = vector.load %arg6[%c0_14, %c0_15, %c0_16] : memref<1x8x32xbf16, #tpu.memory_space<vmem>>, vector<1x8x8xbf16>
      %29 = vector.shape_cast %28 : vector<1x8x8xbf16> to vector<8x8xbf16>
      %30 = vector.shape_cast %27 : vector<8x8xbf16> to vector<1x8x8xbf16>
      tpu.vector_store %arg6[%c0_14, %c0_15, %c0_16], %30 {strides = array<i32>} : memref<1x8x32xbf16, #tpu.memory_space<vmem>>, vector<1x8x8xbf16>,
      %31 = vector.extract_strided_slice %24 {offsets = [1, 0, 0], sizes = [1, 8, 8], strides = [1, 1, 1]} : vector<4x8x8xf32> to vector<1x8x8xf32>
      %32 = vector.shape_cast %31 : vector<1x8x8xf32> to vector<8x8xf32>
      %33 = arith.truncf %32 : vector<8x8xf32> to vector<8x8xbf16>
      %c0_17 = arith.constant 0 : index
      %c0_18 = arith.constant 0 : index
      %c8 = arith.constant 8 : index
      %34 = vector.load %arg6[%c0_17, %c0_18, %c8] : memref<1x8x32xbf16, #tpu.memory_space<vmem>>, vector<1x8x8xbf16>
      %35 = vector.shape_cast %34 : vector<1x8x8xbf16> to vector<8x8xbf16>
      %36 = vector.shape_cast %33 : vector<8x8xbf16> to vector<1x8x8xbf16>
      tpu.vector_store %arg6[%c0_17, %c0_18, %c8], %36 {strides = array<i32>} : memref<1x8x32xbf16, #tpu.memory_space<vmem>>, vector<1x8x8xbf16>,
      %37 = vector.extract_strided_slice %24 {offsets = [2, 0, 0], sizes = [1, 8, 8], strides = [1, 1, 1]} : vector<4x8x8xf32> to vector<1x8x8xf32>
      %38 = vector.shape_cast %37 : vector<1x8x8xf32> to vector<8x8xf32>
      %39 = arith.truncf %38 : vector<8x8xf32> to vector<8x8xbf16>
      %c0_19 = arith.constant 0 : index
      %c0_20 = arith.constant 0 : index
      %c16 = arith.constant 16 : index
      %40 = vector.load %arg6[%c0_19, %c0_20, %c16] : memref<1x8x32xbf16, #tpu.memory_space<vmem>>, vector<1x8x8xbf16>
      %41 = vector.shape_cast %40 : vector<1x8x8xbf16> to vector<8x8xbf16>
      %42 = vector.shape_cast %39 : vector<8x8xbf16> to vector<1x8x8xbf16>
      tpu.vector_store %arg6[%c0_19, %c0_20, %c16], %42 {strides = array<i32>} : memref<1x8x32xbf16, #tpu.memory_space<vmem>>, vector<1x8x8xbf16>,
      %43 = vector.extract_strided_slice %24 {offsets = [3, 0, 0], sizes = [1, 8, 8], strides = [1, 1, 1]} : vector<4x8x8xf32> to vector<1x8x8xf32>
      %44 = vector.shape_cast %43 : vector<1x8x8xf32> to vector<8x8xf32>
      %45 = arith.truncf %44 : vector<8x8xf32> to vector<8x8xbf16>
      %c0_21 = arith.constant 0 : index
      %c0_22 = arith.constant 0 : index
      %c24 = arith.constant 24 : index
      %46 = vector.load %arg6[%c0_21, %c0_22, %c24] : memref<1x8x32xbf16, #tpu.memory_space<vmem>>, vector<1x8x8xbf16>
      %47 = vector.shape_cast %46 : vector<1x8x8xbf16> to vector<8x8xbf16>
      %48 = vector.shape_cast %45 : vector<8x8xbf16> to vector<1x8x8xbf16>
      tpu.vector_store %arg6[%c0_21, %c0_22, %c24], %48 {strides = array<i32>} : memref<1x8x32xbf16, #tpu.memory_space<vmem>>, vector<1x8x8xbf16>,
    } else {
    }
    return
  }
  func.func @transform_0(%arg0: i32, %arg1: i32, %arg2: i32) -> (i32, i32, i32, i32) {
    %c0_i32 = arith.constant 0 : i32
    %c0_i32_0 = arith.constant 0 : i32
    %c0_i32_1 = arith.constant 0 : i32
    return %arg0, %c0_i32, %arg1, %c0_i32_0 : i32, i32, i32, i32
  }
  func.func @transform_1(%arg0: i32, %arg1: i32, %arg2: i32) -> (i32, i32, i32, i32) {
    %0 = arith.minsi %arg2, %arg1 : i32
    %c0_i32 = arith.constant 0 : i32
    %c0_i32_0 = arith.constant 0 : i32
    %c0_i32_1 = arith.constant 0 : i32
    return %arg0, %c0_i32, %0, %c0_i32_0 : i32, i32, i32, i32
  }
  func.func @transform_2(%arg0: i32, %arg1: i32, %arg2: i32) -> (i32, i32, i32, i32) {
    %0 = arith.minsi %arg2, %arg1 : i32
    %c0_i32 = arith.constant 0 : i32
    %c0_i32_0 = arith.constant 0 : i32
    %c0_i32_1 = arith.constant 0 : i32
    return %arg0, %c0_i32, %0, %c0_i32_0 : i32, i32, i32, i32
  }
  func.func @transform_3(%arg0: i32, %arg1: i32, %arg2: i32) -> (i32, i32, i32) {
    %c0_i32 = arith.constant 0 : i32
    %c0_i32_0 = arith.constant 0 : i32
    return %arg0, %arg1, %c0_i32 : i32, i32, i32
  }
}

module attributes {stable_mosaic.version = 11 : i64} {
  func.func @_fused_linear_kernel(%arg0: i32, %arg1: i32, %arg2: memref<16x32xbf16, #tpu.memory_space<vmem>>, %arg3: memref<16x128xf32, #tpu.memory_space<vmem>>, %arg4: memref<32x128xbf16, #tpu.memory_space<vmem>>, %arg5: memref<1x128xf32, #tpu.memory_space<vmem>>, %arg6: memref<16x128xf32, #tpu.memory_space<vmem>>, %arg7: memref<16x32xbf16, #tpu.memory_space<vmem>>) attributes {dimension_semantics = [#tpu.dimension_semantics<parallel>, #tpu.dimension_semantics<arbitrary>], iteration_bounds = array<i64: 1, 1>, scalar_prefetch = 0 : i64, scratch_operands = 1 : i64, tpu.core_type = #tpu.core_type<tc>, window_params = [{transform_indices = @transform_0, window_bounds = array<i64: 16, 32>}, {transform_indices = @transform_1, window_bounds = array<i64: 16, 128>}, {transform_indices = @transform_2, window_bounds = array<i64: 32, 128>}, {transform_indices = @transform_3, window_bounds = array<i64: 1, 128>}, {transform_indices = @transform_4, window_bounds = array<i64: 16, 128>}]} {
    %c0_i32 = arith.constant 0 : i32
    %0 = arith.cmpi eq, %arg1, %c0_i32 : i32
    %1 = arith.extui %0 : i1 to i32
    %c0_i32_0 = arith.constant 0 : i32
    %2 = arith.cmpi ne, %1, %c0_i32_0 : i32
    scf.if %2 {
      %c0_10 = arith.constant 0 : index
      %c0_11 = arith.constant 0 : index
      %12 = vector.load %arg2[%c0_10, %c0_11] : memref<16x32xbf16, #tpu.memory_space<vmem>>, vector<16x32xbf16>
      %13 = arith.extf %12 : vector<16x32xbf16> to vector<16x32xf32>
      %14 = arith.truncf %13 : vector<16x32xf32> to vector<16x32xbf16>
      %c0_12 = arith.constant 0 : index
      %c0_13 = arith.constant 0 : index
      %15 = vector.load %arg7[%c0_12, %c0_13] : memref<16x32xbf16, #tpu.memory_space<vmem>>, vector<16x32xbf16>
      tpu.vector_store %arg7[%c0_12, %c0_13], %14 {strides = array<i32>} : memref<16x32xbf16, #tpu.memory_space<vmem>>, vector<16x32xbf16>,
    } else {
    }
    %c0 = arith.constant 0 : index
    %c0_1 = arith.constant 0 : index
    %3 = vector.load %arg7[%c0, %c0_1] : memref<16x32xbf16, #tpu.memory_space<vmem>>, vector<16x32xbf16>
    %c0_2 = arith.constant 0 : index
    %c0_3 = arith.constant 0 : index
    %4 = vector.load %arg4[%c0_2, %c0_3] : memref<32x128xbf16, #tpu.memory_space<vmem>>, vector<32x128xbf16>
    %cst = arith.constant dense<0.000000e+00> : vector<16x128xf32>
    %5 = tpu.matmul %3, %4, %cst {dimension_numbers = #tpu.dot_dimension_numbers<[1], [0], [0], [1], [0, 0, 1, 1], [], []>} : vector<16x32xbf16>, vector<32x128xbf16>, vector<16x128xf32> -> vector<16x128xf32>
    %c0_4 = arith.constant 0 : index
    %c0_5 = arith.constant 0 : index
    %6 = vector.load %arg5[%c0_4, %c0_5] : memref<1x128xf32, #tpu.memory_space<vmem>>, vector<1x128xf32>
    %7 = vector.broadcast %6 : vector<1x128xf32> to vector<16x128xf32>
    %8 = arith.addf %5, %7 : vector<16x128xf32>
    %c0_6 = arith.constant 0 : index
    %c0_7 = arith.constant 0 : index
    %9 = vector.load %arg3[%c0_6, %c0_7] : memref<16x128xf32, #tpu.memory_space<vmem>>, vector<16x128xf32>
    %10 = arith.addf %8, %9 : vector<16x128xf32>
    %c0_8 = arith.constant 0 : index
    %c0_9 = arith.constant 0 : index
    %11 = vector.load %arg6[%c0_8, %c0_9] : memref<16x128xf32, #tpu.memory_space<vmem>>, vector<16x128xf32>
    tpu.vector_store %arg6[%c0_8, %c0_9], %10 {strides = array<i32>} : memref<16x128xf32, #tpu.memory_space<vmem>>, vector<16x128xf32>,
    return
  }
  func.func @transform_0(%arg0: i32, %arg1: i32) -> (i32, i32) {
    %c0_i32 = arith.constant 0 : i32
    %c0_i32_0 = arith.constant 0 : i32
    return %arg0, %c0_i32 : i32, i32
  }
  func.func @transform_1(%arg0: i32, %arg1: i32) -> (i32, i32) {
    %c0_i32 = arith.constant 0 : i32
    return %arg0, %arg1 : i32, i32
  }
  func.func @transform_2(%arg0: i32, %arg1: i32) -> (i32, i32) {
    %c0_i32 = arith.constant 0 : i32
    %c0_i32_0 = arith.constant 0 : i32
    return %c0_i32, %arg1 : i32, i32
  }
  func.func @transform_3(%arg0: i32, %arg1: i32) -> (i32, i32) {
    %c0_i32 = arith.constant 0 : i32
    %c0_i32_0 = arith.constant 0 : i32
    return %c0_i32, %arg1 : i32, i32
  }
  func.func @transform_4(%arg0: i32, %arg1: i32) -> (i32, i32) {
    %c0_i32 = arith.constant 0 : i32
    return %arg0, %arg1 : i32, i32
  }
}

module attributes {stable_mosaic.version = 11 : i64} {
  func.func @_fused_linear_kernel(%arg0: i32, %arg1: i32, %arg2: memref<16x32xf32, #tpu.memory_space<vmem>>, %arg3: memref<1x32xf32, #tpu.memory_space<vmem>>, %arg4: memref<1x32xf32, #tpu.memory_space<vmem>>, %arg5: memref<32x128xbf16, #tpu.memory_space<vmem>>, %arg6: memref<1x128xf32, #tpu.memory_space<vmem>>, %arg7: memref<16x128xbf16, #tpu.memory_space<vmem>>, %arg8: memref<16x32xbf16, #tpu.memory_space<vmem>>) attributes {dimension_semantics = [#tpu.dimension_semantics<parallel>, #tpu.dimension_semantics<arbitrary>], iteration_bounds = array<i64: 1, 1>, scalar_prefetch = 0 : i64, scratch_operands = 1 : i64, tpu.core_type = #tpu.core_type<tc>, window_params = [{transform_indices = @transform_0, window_bounds = array<i64: 16, 32>}, {pipeline_mode = #tpu.pipeline_mode<synchronous>, transform_indices = @transform_1, window_bounds = array<i64: 1, 32>}, {pipeline_mode = #tpu.pipeline_mode<synchronous>, transform_indices = @transform_2, window_bounds = array<i64: 1, 32>}, {transform_indices = @transform_3, window_bounds = array<i64: 32, 128>}, {transform_indices = @transform_4, window_bounds = array<i64: 1, 128>}, {transform_indices = @transform_5, window_bounds = array<i64: 16, 128>}]} {
    %c0_i32 = arith.constant 0 : i32
    %0 = arith.cmpi eq, %arg1, %c0_i32 : i32
    %1 = arith.extui %0 : i1 to i32
    %c0_i32_0 = arith.constant 0 : i32
    %2 = arith.cmpi ne, %1, %c0_i32_0 : i32
    scf.if %2 {
      %c0_23 = arith.constant 0 : index
      %c0_24 = arith.constant 0 : index
      %51 = vector.load %arg2[%c0_23, %c0_24] : memref<16x32xf32, #tpu.memory_space<vmem>>, vector<16x32xf32>
      %c0_25 = arith.constant 0 : index
      %c0_26 = arith.constant 0 : index
      %52 = vector.load %arg3[%c0_25, %c0_26] : memref<1x32xf32, #tpu.memory_space<vmem>>, vector<1x32xf32>
      %c0_27 = arith.constant 0 : index
      %c0_28 = arith.constant 0 : index
      %53 = vector.load %arg4[%c0_27, %c0_28] : memref<1x32xf32, #tpu.memory_space<vmem>>, vector<1x32xf32>
      %cst_29 = arith.constant dense<0.000000e+00> : vector<16xf32>
      %54 = vector.multi_reduction <add>, %51, %cst_29 [1] : vector<16x32xf32> to vector<16xf32>
      %55 = vector.shape_cast %54 : vector<16xf32> to vector<16x1xf32>
      %cst_30 = arith.constant 3.200000e+01 : f32
      %56 = vector.broadcast %cst_30 : f32 to vector<16x1xf32>
      %57 = arith.divf %55, %56 : vector<16x1xf32>
      %58 = vector.broadcast %57 : vector<16x1xf32> to vector<16x32xf32>
      %59 = arith.subf %51, %58 : vector<16x32xf32>
      %60 = arith.mulf %59, %59 : vector<16x32xf32>
      %cst_31 = arith.constant dense<0.000000e+00> : vector<16xf32>
      %61 = vector.multi_reduction <add>, %60, %cst_31 [1] : vector<16x32xf32> to vector<16xf32>
      %62 = vector.shape_cast %61 : vector<16xf32> to vector<16x1xf32>
      %cst_32 = arith.constant 3.200000e+01 : f32
      %63 = vector.broadcast %cst_32 : f32 to vector<16x1xf32>
      %64 = arith.divf %62, %63 : vector<16x1xf32>
      %65 = vector.broadcast %57 : vector<16x1xf32> to vector<16x32xf32>
      %66 = arith.subf %51, %65 : vector<16x32xf32>
      %cst_33 = arith.constant 9.99999974E-6 : f32
      %67 = vector.broadcast %cst_33 : f32 to vector<16x1xf32>
      %68 = arith.addf %64, %67 : vector<16x1xf32>
      %69 = math.rsqrt %68 : vector<16x1xf32>
      %70 = vector.broadcast %69 : vector<16x1xf32> to vector<16x32xf32>
      %71 = arith.mulf %66, %70 : vector<16x32xf32>
      %72 = vector.broadcast %52 : vector<1x32xf32> to vector<16x32xf32>
      %73 = arith.mulf %71, %72 : vector<16x32xf32>
      %74 = vector.broadcast %53 : vector<1x32xf32> to vector<16x32xf32>
      %75 = arith.addf %73, %74 : vector<16x32xf32>
      %76 = arith.truncf %75 : vector<16x32xf32> to vector<16x32xbf16>
      %c0_34 = arith.constant 0 : index
      %c0_35 = arith.constant 0 : index
      %77 = vector.load %arg8[%c0_34, %c0_35] : memref<16x32xbf16, #tpu.memory_space<vmem>>, vector<16x32xbf16>
      tpu.vector_store %arg8[%c0_34, %c0_35], %76 {strides = array<i32>} : memref<16x32xbf16, #tpu.memory_space<vmem>>, vector<16x32xbf16>,
    } else {
    }
    %c0 = arith.constant 0 : index
    %c0_1 = arith.constant 0 : index
    %3 = vector.load %arg8[%c0, %c0_1] : memref<16x32xbf16, #tpu.memory_space<vmem>>, vector<16x32xbf16>
    %c0_2 = arith.constant 0 : index
    %c0_3 = arith.constant 0 : index
    %4 = vector.load %arg5[%c0_2, %c0_3] : memref<32x128xbf16, #tpu.memory_space<vmem>>, vector<32x128xbf16>
    %cst = arith.constant dense<0.000000e+00> : vector<16x128xf32>
    %5 = tpu.matmul %3, %4, %cst {dimension_numbers = #tpu.dot_dimension_numbers<[1], [0], [0], [1], [0, 0, 1, 1], [], []>} : vector<16x32xbf16>, vector<32x128xbf16>, vector<16x128xf32> -> vector<16x128xf32>
    %c0_4 = arith.constant 0 : index
    %c0_5 = arith.constant 0 : index
    %6 = vector.load %arg6[%c0_4, %c0_5] : memref<1x128xf32, #tpu.memory_space<vmem>>, vector<1x128xf32>
    %7 = vector.broadcast %6 : vector<1x128xf32> to vector<16x128xf32>
    %8 = arith.addf %5, %7 : vector<16x128xf32>
    %cst_6 = arith.constant 5.000000e-01 : f32
    %9 = vector.broadcast %cst_6 : f32 to vector<16x128xf32>
    %10 = arith.mulf %9, %8 : vector<16x128xf32>
    %cst_7 = arith.constant 0.707106769 : f32
    %11 = vector.broadcast %cst_7 : f32 to vector<16x128xf32>
    %12 = arith.mulf %8, %11 : vector<16x128xf32>
    %13 = math.absf %12 : vector<16x128xf32>
    %cst_8 = arith.constant 0.327591091 : f32
    %14 = vector.broadcast %cst_8 : f32 to vector<16x128xf32>
    %15 = arith.mulf %14, %13 : vector<16x128xf32>
    %cst_9 = arith.constant 1.000000e+00 : f32
    %16 = vector.broadcast %cst_9 : f32 to vector<16x128xf32>
    %17 = arith.addf %16, %15 : vector<16x128xf32>
    %cst_10 = arith.constant 1.000000e+00 : f32
    %18 = vector.broadcast %cst_10 : f32 to vector<16x128xf32>
    %19 = arith.divf %18, %17 : vector<16x128xf32>
    %cst_11 = arith.constant 1.06140542 : f32
    %20 = vector.broadcast %cst_11 : f32 to vector<16x128xf32>
    %21 = arith.mulf %20, %19 : vector<16x128xf32>
    %cst_12 = arith.constant -1.45315206 : f32
    %22 = vector.broadcast %cst_12 : f32 to vector<16x128xf32>
    %23 = arith.addf %21, %22 : vector<16x128xf32>
    %24 = arith.mulf %23, %19 : vector<16x128xf32>
    %cst_13 = arith.constant 1.42141378 : f32
    %25 = vector.broadcast %cst_13 : f32 to vector<16x128xf32>
    %26 = arith.addf %24, %25 : vector<16x128xf32>
    %27 = arith.mulf %26, %19 : vector<16x128xf32>
    %cst_14 = arith.constant -0.284496725 : f32
    %28 = vector.broadcast %cst_14 : f32 to vector<16x128xf32>
    %29 = arith.addf %27, %28 : vector<16x128xf32>
    %30 = arith.mulf %29, %19 : vector<16x128xf32>
    %cst_15 = arith.constant 0.254829586 : f32
    %31 = vector.broadcast %cst_15 : f32 to vector<16x128xf32>
    %32 = arith.addf %30, %31 : vector<16x128xf32>
    %33 = arith.mulf %32, %19 : vector<16x128xf32>
    %34 = arith.mulf %13, %13 : vector<16x128xf32>
    %cst_16 = arith.constant 0.000000e+00 : f32
    %35 = vector.broadcast %cst_16 : f32 to vector<16x128xf32>
    %36 = arith.subf %35, %34 : vector<16x128xf32>
    %37 = math.exp %36 : vector<16x128xf32>
    %38 = arith.mulf %33, %37 : vector<16x128xf32>
    %cst_17 = arith.constant 1.000000e+00 : f32
    %39 = vector.broadcast %cst_17 : f32 to vector<16x128xf32>
    %40 = arith.subf %39, %38 : vector<16x128xf32>
    %cst_18 = arith.constant 0.000000e+00 : f32
    %41 = vector.broadcast %cst_18 : f32 to vector<16x128xf32>
    %42 = arith.cmpf olt, %12, %41 : vector<16x128xf32>
    %cst_19 = arith.constant 0.000000e+00 : f32
    %43 = vector.broadcast %cst_19 : f32 to vector<16x128xf32>
    %44 = arith.subf %43, %40 : vector<16x128xf32>
    %45 = arith.select %42, %44, %40 : vector<16x128xi1>, vector<16x128xf32>
    %cst_20 = arith.constant 1.000000e+00 : f32
    %46 = vector.broadcast %cst_20 : f32 to vector<16x128xf32>
    %47 = arith.addf %46, %45 : vector<16x128xf32>
    %48 = arith.mulf %10, %47 : vector<16x128xf32>
    %49 = arith.truncf %48 : vector<16x128xf32> to vector<16x128xbf16>
    %c0_21 = arith.constant 0 : index
    %c0_22 = arith.constant 0 : index
    %50 = vector.load %arg7[%c0_21, %c0_22] : memref<16x128xbf16, #tpu.memory_space<vmem>>, vector<16x128xbf16>
    tpu.vector_store %arg7[%c0_21, %c0_22], %49 {strides = array<i32>} : memref<16x128xbf16, #tpu.memory_space<vmem>>, vector<16x128xbf16>,
    return
  }
  func.func @transform_0(%arg0: i32, %arg1: i32) -> (i32, i32) {
    %c0_i32 = arith.constant 0 : i32
    %c0_i32_0 = arith.constant 0 : i32
    return %arg0, %c0_i32 : i32, i32
  }
  func.func @transform_1(%arg0: i32, %arg1: i32) -> (i32, i32) {
    %c0_i32 = arith.constant 0 : i32
    %c0_i32_0 = arith.constant 0 : i32
    %c0_i32_1 = arith.constant 0 : i32
    return %c0_i32, %c0_i32_0 : i32, i32
  }
  func.func @transform_2(%arg0: i32, %arg1: i32) -> (i32, i32) {
    %c0_i32 = arith.constant 0 : i32
    %c0_i32_0 = arith.constant 0 : i32
    %c0_i32_1 = arith.constant 0 : i32
    return %c0_i32, %c0_i32_0 : i32, i32
  }
  func.func @transform_3(%arg0: i32, %arg1: i32) -> (i32, i32) {
    %c0_i32 = arith.constant 0 : i32
    %c0_i32_0 = arith.constant 0 : i32
    return %c0_i32, %arg1 : i32, i32
  }
  func.func @transform_4(%arg0: i32, %arg1: i32) -> (i32, i32) {
    %c0_i32 = arith.constant 0 : i32
    %c0_i32_0 = arith.constant 0 : i32
    return %c0_i32, %arg1 : i32, i32
  }
  func.func @transform_5(%arg0: i32, %arg1: i32) -> (i32, i32) {
    %c0_i32 = arith.constant 0 : i32
    return %arg0, %arg1 : i32, i32
  }
}

module attributes {stable_mosaic.version = 11 : i64} {
  func.func @_fused_linear_kernel(%arg0: i32, %arg1: i32, %arg2: memref<16x128xbf16, #tpu.memory_space<vmem>>, %arg3: memref<16x128xf32, #tpu.memory_space<vmem>>, %arg4: memref<128x128xbf16, #tpu.memory_space<vmem>>, %arg5: memref<1x128xf32, #tpu.memory_space<vmem>>, %arg6: memref<16x128xf32, #tpu.memory_space<vmem>>, %arg7: memref<16x128xbf16, #tpu.memory_space<vmem>>) attributes {dimension_semantics = [#tpu.dimension_semantics<parallel>, #tpu.dimension_semantics<arbitrary>], iteration_bounds = array<i64: 1, 1>, scalar_prefetch = 0 : i64, scratch_operands = 1 : i64, tpu.core_type = #tpu.core_type<tc>, window_params = [{transform_indices = @transform_0, window_bounds = array<i64: 16, 128>}, {transform_indices = @transform_1, window_bounds = array<i64: 16, 128>}, {transform_indices = @transform_2, window_bounds = array<i64: 128, 128>}, {transform_indices = @transform_3, window_bounds = array<i64: 1, 128>}, {transform_indices = @transform_4, window_bounds = array<i64: 16, 128>}]} {
    %c0_i32 = arith.constant 0 : i32
    %0 = arith.cmpi eq, %arg1, %c0_i32 : i32
    %1 = arith.extui %0 : i1 to i32
    %c0_i32_0 = arith.constant 0 : i32
    %2 = arith.cmpi ne, %1, %c0_i32_0 : i32
    scf.if %2 {
      %c0_10 = arith.constant 0 : index
      %c0_11 = arith.constant 0 : index
      %12 = vector.load %arg2[%c0_10, %c0_11] : memref<16x128xbf16, #tpu.memory_space<vmem>>, vector<16x128xbf16>
      %13 = arith.extf %12 : vector<16x128xbf16> to vector<16x128xf32>
      %14 = arith.truncf %13 : vector<16x128xf32> to vector<16x128xbf16>
      %c0_12 = arith.constant 0 : index
      %c0_13 = arith.constant 0 : index
      %15 = vector.load %arg7[%c0_12, %c0_13] : memref<16x128xbf16, #tpu.memory_space<vmem>>, vector<16x128xbf16>
      tpu.vector_store %arg7[%c0_12, %c0_13], %14 {strides = array<i32>} : memref<16x128xbf16, #tpu.memory_space<vmem>>, vector<16x128xbf16>,
    } else {
    }
    %c0 = arith.constant 0 : index
    %c0_1 = arith.constant 0 : index
    %3 = vector.load %arg7[%c0, %c0_1] : memref<16x128xbf16, #tpu.memory_space<vmem>>, vector<16x128xbf16>
    %c0_2 = arith.constant 0 : index
    %c0_3 = arith.constant 0 : index
    %4 = vector.load %arg4[%c0_2, %c0_3] : memref<128x128xbf16, #tpu.memory_space<vmem>>, vector<128x128xbf16>
    %cst = arith.constant dense<0.000000e+00> : vector<16x128xf32>
    %5 = tpu.matmul %3, %4, %cst {dimension_numbers = #tpu.dot_dimension_numbers<[1], [0], [0], [1], [0, 0, 1, 1], [], []>} : vector<16x128xbf16>, vector<128x128xbf16>, vector<16x128xf32> -> vector<16x128xf32>
    %c0_4 = arith.constant 0 : index
    %c0_5 = arith.constant 0 : index
    %6 = vector.load %arg5[%c0_4, %c0_5] : memref<1x128xf32, #tpu.memory_space<vmem>>, vector<1x128xf32>
    %7 = vector.broadcast %6 : vector<1x128xf32> to vector<16x128xf32>
    %8 = arith.addf %5, %7 : vector<16x128xf32>
    %c0_6 = arith.constant 0 : index
    %c0_7 = arith.constant 0 : index
    %9 = vector.load %arg3[%c0_6, %c0_7] : memref<16x128xf32, #tpu.memory_space<vmem>>, vector<16x128xf32>
    %10 = arith.addf %8, %9 : vector<16x128xf32>
    %c0_8 = arith.constant 0 : index
    %c0_9 = arith.constant 0 : index
    %11 = vector.load %arg6[%c0_8, %c0_9] : memref<16x128xf32, #tpu.memory_space<vmem>>, vector<16x128xf32>
    tpu.vector_store %arg6[%c0_8, %c0_9], %10 {strides = array<i32>} : memref<16x128xf32, #tpu.memory_space<vmem>>, vector<16x128xf32>,
    return
  }
  func.func @transform_0(%arg0: i32, %arg1: i32) -> (i32, i32) {
    %c0_i32 = arith.constant 0 : i32
    %c0_i32_0 = arith.constant 0 : i32
    return %arg0, %c0_i32 : i32, i32
  }
  func.func @transform_1(%arg0: i32, %arg1: i32) -> (i32, i32) {
    %c0_i32 = arith.constant 0 : i32
    return %arg0, %arg1 : i32, i32
  }
  func.func @transform_2(%arg0: i32, %arg1: i32) -> (i32, i32) {
    %c0_i32 = arith.constant 0 : i32
    %c0_i32_0 = arith.constant 0 : i32
    return %c0_i32, %arg1 : i32, i32
  }
  func.func @transform_3(%arg0: i32, %arg1: i32) -> (i32, i32) {
    %c0_i32 = arith.constant 0 : i32
    %c0_i32_0 = arith.constant 0 : i32
    return %c0_i32, %arg1 : i32, i32
  }
  func.func @transform_4(%arg0: i32, %arg1: i32) -> (i32, i32) {
    %c0_i32 = arith.constant 0 : i32
    return %arg0, %arg1 : i32, i32
  }
}

module attributes {stable_mosaic.version = 11 : i64} {
  func.func @_fused_linear_kernel(%arg0: i32, %arg1: i32, %arg2: memref<16x32xf32, #tpu.memory_space<vmem>>, %arg3: memref<1x32xf32, #tpu.memory_space<vmem>>, %arg4: memref<1x32xf32, #tpu.memory_space<vmem>>, %arg5: memref<32x128xbf16, #tpu.memory_space<vmem>>, %arg6: memref<1x128xf32, #tpu.memory_space<vmem>>, %arg7: memref<16x128xf32, #tpu.memory_space<vmem>>, %arg8: memref<16x32xbf16, #tpu.memory_space<vmem>>) attributes {dimension_semantics = [#tpu.dimension_semantics<parallel>, #tpu.dimension_semantics<arbitrary>], iteration_bounds = array<i64: 1, 1>, scalar_prefetch = 0 : i64, scratch_operands = 1 : i64, tpu.core_type = #tpu.core_type<tc>, window_params = [{transform_indices = @transform_0, window_bounds = array<i64: 16, 32>}, {pipeline_mode = #tpu.pipeline_mode<synchronous>, transform_indices = @transform_1, window_bounds = array<i64: 1, 32>}, {pipeline_mode = #tpu.pipeline_mode<synchronous>, transform_indices = @transform_2, window_bounds = array<i64: 1, 32>}, {transform_indices = @transform_3, window_bounds = array<i64: 32, 128>}, {transform_indices = @transform_4, window_bounds = array<i64: 1, 128>}, {transform_indices = @transform_5, window_bounds = array<i64: 16, 128>}]} {
    %c0_i32 = arith.constant 0 : i32
    %0 = arith.cmpi eq, %arg1, %c0_i32 : i32
    %1 = arith.extui %0 : i1 to i32
    %c0_i32_0 = arith.constant 0 : i32
    %2 = arith.cmpi ne, %1, %c0_i32_0 : i32
    scf.if %2 {
      %c0_8 = arith.constant 0 : index
      %c0_9 = arith.constant 0 : index
      %10 = vector.load %arg2[%c0_8, %c0_9] : memref<16x32xf32, #tpu.memory_space<vmem>>, vector<16x32xf32>
      %c0_10 = arith.constant 0 : index
      %c0_11 = arith.constant 0 : index
      %11 = vector.load %arg3[%c0_10, %c0_11] : memref<1x32xf32, #tpu.memory_space<vmem>>, vector<1x32xf32>
      %c0_12 = arith.constant 0 : index
      %c0_13 = arith.constant 0 : index
      %12 = vector.load %arg4[%c0_12, %c0_13] : memref<1x32xf32, #tpu.memory_space<vmem>>, vector<1x32xf32>
      %cst_14 = arith.constant dense<0.000000e+00> : vector<16xf32>
      %13 = vector.multi_reduction <add>, %10, %cst_14 [1] : vector<16x32xf32> to vector<16xf32>
      %14 = vector.shape_cast %13 : vector<16xf32> to vector<16x1xf32>
      %cst_15 = arith.constant 3.200000e+01 : f32
      %15 = vector.broadcast %cst_15 : f32 to vector<16x1xf32>
      %16 = arith.divf %14, %15 : vector<16x1xf32>
      %17 = vector.broadcast %16 : vector<16x1xf32> to vector<16x32xf32>
      %18 = arith.subf %10, %17 : vector<16x32xf32>
      %19 = arith.mulf %18, %18 : vector<16x32xf32>
      %cst_16 = arith.constant dense<0.000000e+00> : vector<16xf32>
      %20 = vector.multi_reduction <add>, %19, %cst_16 [1] : vector<16x32xf32> to vector<16xf32>
      %21 = vector.shape_cast %20 : vector<16xf32> to vector<16x1xf32>
      %cst_17 = arith.constant 3.200000e+01 : f32
      %22 = vector.broadcast %cst_17 : f32 to vector<16x1xf32>
      %23 = arith.divf %21, %22 : vector<16x1xf32>
      %24 = vector.broadcast %16 : vector<16x1xf32> to vector<16x32xf32>
      %25 = arith.subf %10, %24 : vector<16x32xf32>
      %cst_18 = arith.constant 9.99999974E-6 : f32
      %26 = vector.broadcast %cst_18 : f32 to vector<16x1xf32>
      %27 = arith.addf %23, %26 : vector<16x1xf32>
      %28 = math.rsqrt %27 : vector<16x1xf32>
      %29 = vector.broadcast %28 : vector<16x1xf32> to vector<16x32xf32>
      %30 = arith.mulf %25, %29 : vector<16x32xf32>
      %31 = vector.broadcast %11 : vector<1x32xf32> to vector<16x32xf32>
      %32 = arith.mulf %30, %31 : vector<16x32xf32>
      %33 = vector.broadcast %12 : vector<1x32xf32> to vector<16x32xf32>
      %34 = arith.addf %32, %33 : vector<16x32xf32>
      %35 = arith.truncf %34 : vector<16x32xf32> to vector<16x32xbf16>
      %c0_19 = arith.constant 0 : index
      %c0_20 = arith.constant 0 : index
      %36 = vector.load %arg8[%c0_19, %c0_20] : memref<16x32xbf16, #tpu.memory_space<vmem>>, vector<16x32xbf16>
      tpu.vector_store %arg8[%c0_19, %c0_20], %35 {strides = array<i32>} : memref<16x32xbf16, #tpu.memory_space<vmem>>, vector<16x32xbf16>,
    } else {
    }
    %c0 = arith.constant 0 : index
    %c0_1 = arith.constant 0 : index
    %3 = vector.load %arg8[%c0, %c0_1] : memref<16x32xbf16, #tpu.memory_space<vmem>>, vector<16x32xbf16>
    %c0_2 = arith.constant 0 : index
    %c0_3 = arith.constant 0 : index
    %4 = vector.load %arg5[%c0_2, %c0_3] : memref<32x128xbf16, #tpu.memory_space<vmem>>, vector<32x128xbf16>
    %cst = arith.constant dense<0.000000e+00> : vector<16x128xf32>
    %5 = tpu.matmul %3, %4, %cst {dimension_numbers = #tpu.dot_dimension_numbers<[1], [0], [0], [1], [0, 0, 1, 1], [], []>} : vector<16x32xbf16>, vector<32x128xbf16>, vector<16x128xf32> -> vector<16x128xf32>
    %c0_4 = arith.constant 0 : index
    %c0_5 = arith.constant 0 : index
    %6 = vector.load %arg6[%c0_4, %c0_5] : memref<1x128xf32, #tpu.memory_space<vmem>>, vector<1x128xf32>
    %7 = vector.broadcast %6 : vector<1x128xf32> to vector<16x128xf32>
    %8 = arith.addf %5, %7 : vector<16x128xf32>
    %c0_6 = arith.constant 0 : index
    %c0_7 = arith.constant 0 : index
    %9 = vector.load %arg7[%c0_6, %c0_7] : memref<16x128xf32, #tpu.memory_space<vmem>>, vector<16x128xf32>
    tpu.vector_store %arg7[%c0_6, %c0_7], %8 {strides = array<i32>} : memref<16x128xf32, #tpu.memory_space<vmem>>, vector<16x128xf32>,
    return
  }
  func.func @transform_0(%arg0: i32, %arg1: i32) -> (i32, i32) {
    %c0_i32 = arith.constant 0 : i32
    %c0_i32_0 = arith.constant 0 : i32
    return %arg0, %c0_i32 : i32, i32
  }
  func.func @transform_1(%arg0: i32, %arg1: i32) -> (i32, i32) {
    %c0_i32 = arith.constant 0 : i32
    %c0_i32_0 = arith.constant 0 : i32
    %c0_i32_1 = arith.constant 0 : i32
    return %c0_i32, %c0_i32_0 : i32, i32
  }
  func.func @transform_2(%arg0: i32, %arg1: i32) -> (i32, i32) {
    %c0_i32 = arith.constant 0 : i32
    %c0_i32_0 = arith.constant 0 : i32
    %c0_i32_1 = arith.constant 0 : i32
    return %c0_i32, %c0_i32_0 : i32, i32
  }
  func.func @transform_3(%arg0: i32, %arg1: i32) -> (i32, i32) {
    %c0_i32 = arith.constant 0 : i32
    %c0_i32_0 = arith.constant 0 : i32
    return %c0_i32, %arg1 : i32, i32
  }
  func.func @transform_4(%arg0: i32, %arg1: i32) -> (i32, i32) {
    %c0_i32 = arith.constant 0 : i32
    %c0_i32_0 = arith.constant 0 : i32
    return %c0_i32, %arg1 : i32, i32
  }
  func.func @transform_5(%arg0: i32, %arg1: i32) -> (i32, i32) {
    %c0_i32 = arith.constant 0 : i32
    return %arg0, %arg1 : i32, i32
  }
}

</mosaic_0001>

<bundles_post_ra>
// kernel: gpt_forward.14
= control target key start
LH: loop header
LB: loop body
LE: loop exit
PB: predicated region body
PF: predicated region fallthrough
CT: control target
= control target key end

     0   :  { %vm29_vm0 = vcmask 261120   ;;  %v254_v15 = vmov 0.0   ;;  %vm255_vm1 = vmmov 0   ;;  %s316_s0 = inlined_call_operand.vmem [shape: f32[16,32], index: 0, kind: input, shape index: {}]   ;;  %s317_s3 = inlined_call_operand.vmem [shape: bf16[32,128], index: 3, kind: input, shape index: {}]   ;;  %s318_s1 = inlined_call_operand.vmem [shape: f32[1,32], index: 1, kind: input, shape index: {}]   ;;  %s319_s2 = inlined_call_operand.vmem [shape: f32[1,32], index: 2, kind: input, shape index: {}]   ;;  %s320_s4 = inlined_call_operand.vmem [shape: f32[1,128], index: 4, kind: input, shape index: {}]   ;;  %s321_s5 = inlined_call_operand.vmem [shape: bf16[16,128], index: 5, kind: output, shape index: {}]  }
   0x1   :  { %v25_v0 = vld [vmem:[%s316_s0] sm:$0xff]  ;;  %v26_v1 = vld [vmem:[%s316_s0 + $0x8] sm:$0xff]  ;;  %230 = vmatprep.subr.bf16.mxu0 %v254_v15  ;;  %234 = vmatprep.mubr.msk.bf16.mxu0 %vm255_vm1, %v254_v15 }
   0x2   :  { %v30_v2 = vsel %vm29_vm0, %v25_v0, 0.0  ;;  %v33_v3 = vsel %vm29_vm0, %v26_v1, 0.0  ;;  %v240_v14 = vld [vmem:[%s317_s3] sm:$0xff]   ;;  %v241_v16 = vld [vmem:[%s317_s3 + $0x8] sm:$0xff]  }
   0x3   :  { %31 = vadd.xlane.f32.xlu0 %v30_v2  ;;  %231 = vmatpush3.bf16.msra.mxu0 %v240_v14  ;;  %v212_v25 = vld [vmem:[%s318_s1] ss:$0 sm:$0xff] }
   0x4   :  { %232 = vmatprep.subr.bf16.mxu0 %v254_v15  ;;  %v213_v29 = vld [vmem:[%s319_s2] ss:$0 sm:$0xff] }
   0x5   :  { %v214_v35 = vld [vmem:[%s320_s4] ss:$0 sm:$0xff] }
   0x7   :  { %34 = vadd.xlane.f32.xlu0 %v33_v3  ;;  %233 = vmatpush3.bf16.msra.mxu0 %v241_v16 }
  0x90   :  { %v32_v4 = vpop.xlane.xlu0 %31 }
  0x91   :  { %v37_v5 = vmul.f32 0.03125, %v32_v4 }
  0x93   :  { %v39_v6 = vsub.f32 %v25_v0, %v37_v5 }
  0x94   :  { %v35_v7 = vpop.xlane.xlu0 %34 }
  0x95   :  { %v38_v8 = vmul.f32 0.03125, %v35_v7  ;;  %v41_v9 = vmul.f32 %v39_v6, %v39_v6 }
  0x97   :  { %v40_v10 = vsub.f32 %v26_v1, %v38_v8  ;;  %v43_v11 = vsel %vm29_vm0, %v41_v9, 0.0 }
  0x98   :  { %44 = vadd.xlane.f32.xlu1 %v43_v11 }
  0x99   :  { %v42_v12 = vmul.f32 %v40_v10, %v40_v10 }
  0x9b   :  { %v46_v13 = vsel %vm29_vm0, %v42_v12, 0.0 }
  0x9c   :  { %47 = vadd.xlane.f32.xlu1 %v46_v13 }
 0x125   :  { %v45_v17 = vpop.xlane.xlu1 %44 }
 0x126   :  { %v49_v18 = vmul.f32 0.03125, %v45_v17 }
 0x128   :  { %v51_v19 = vadd.f32 1e-05, %v49_v18 }
 0x129   :  { %v48_v20 = vpop.xlane.xlu1 %47 }
 0x12a   :  { %242 = vrsqrt.f32 %v51_v19  ;;  %v50_v21 = vmul.f32 0.03125, %v48_v20 }
 0x12c   :  { %v52_v22 = vadd.f32 1e-05, %v50_v21 }
 0x12e   :  { %244 = vrsqrt.f32 %v52_v22 }
 0x134   :  { %v243_v23 = vpop.eup %242 }
 0x135   :  { %v55_v24 = vmul.f32 %v243_v23, %v39_v6 }
 0x137   :  { %v63_v27 = vmul.f32 %v212_v25, %v55_v24 }
 0x138   :  { %v245_v26 = vpop.eup %244 }
 0x139   :  { %v56_v28 = vmul.f32 %v245_v26, %v40_v10  ;;  %v71_v31 = vadd.f32 %v213_v29, %v63_v27 }
 0x13b   :  { %v64_v30 = vmul.f32 %v212_v25, %v56_v28 }
 0x13d   :  { %v72_v32 = vadd.f32 %v213_v29, %v64_v30 }
 0x13f   :  { %v73_v33 = vpack.c.bf16 %v72_v32, %v71_v31 }
 0x141   :  { %74 = vst.msk [vmem:[#allocation2] sm:$0xff] %vm29_vm0, %v73_v33 }
 0x148   :  { %v75_v34 = vld [vmem:[#allocation2] sm:$0xff] }
 0x149   :  { %235 = vmatmul.mubr.msk.bf16.vlgmr.msra.gmra.mrb[0].mxu0 %vm29_vm0, %v75_v34 }
 0x21c   :  { %v137_v36 = vpop.f32.mrb[0].mxu0 }
 0x21d   :  { %v138_v37 = vadd.f32 %v214_v35, %v137_v36  ;;  %v236_v38 = vpop.f32.mrb[1].mxu0 }
 0x21e   :  { %v140_v39 = vpop.f32.mrb[2].mxu0 }
 0x21f   :  { %v146_v40 = vmul.f32 0.70710677, %v138_v37  ;;  %v141_v41 = vadd.f32 %v214_v35, %v140_v39  ;;  %v237_v42 = vpop.f32.mrb[3].mxu0  ;;  %v144_v23 = vmul.f32 0.5, %v138_v37 }
 0x221   :  { %v148_v43 = vand.u32 2147483647, %v146_v40  ;;  %v147_v44 = vmul.f32 0.70710677, %v141_v41  ;;  %vm188_vm2 = vcmp.lt.f32.partialorder %v146_v40, 0.0  ;;  %v145_v24 = vmul.f32 0.5, %v141_v41 }
 0x223   :  { %v150_v45 = vmul.f32 0.3275911, %v148_v43  ;;  %v149_v46 = vand.u32 2147483647, %v147_v44  ;;  %v176_v50 = vmul.f32 %v148_v43, %v148_v43  ;;  %vm189_vm3 = vcmp.lt.f32.partialorder %v147_v44, 0.0 }
 0x225   :  { %v152_v47 = vadd.f32 1.0, %v150_v45  ;;  %v151_v48 = vmul.f32 0.3275911, %v149_v46  ;;  %v177_v51 = vmul.f32 %v149_v46, %v149_v46  ;;  %v178_v53 = vsub.f32 0.0, %v176_v50 }
 0x227   :  { %246 = vrcp.f32 %v152_v47  ;;  %v153_v49 = vadd.f32 1.0, %v151_v48  ;;  %v179_v57 = vsub.f32 0.0, %v177_v51  ;;  %v180_v58 = vmul.f32 1.442695, %v178_v53 }
 0x229   :  { %248 = vrcp.f32 %v153_v49  ;;  %v182_v63 = vmul.f32 1.442695, %v179_v57 }
 0x22a   :  { %250 = vpow2.f32 %v180_v58 }
 0x22b   :  { %252 = vpow2.f32 %v182_v63 }
 0x231   :  { %v247_v52 = vpop.eup %246 }
 0x232   :  { %v158_v54 = vmul.f32 1.0614054, %v247_v52 }
 0x233   :  { %v249_v55 = vpop.eup %248 }
 0x234   :  { %v160_v56 = vadd.f32 -1.4531521, %v158_v54  ;;  %v159_v59 = vmul.f32 1.0614054, %v249_v55  ;;  %v251_v10 = vpop.eup %250 }
 0x235   :  { %v253_v14 = vpop.eup %252 }
 0x236   :  { %v162_v60 = vmul.f32 %v247_v52, %v160_v56  ;;  %v161_v61 = vadd.f32 -1.4531521, %v159_v59 }
 0x238   :  { %v164_v62 = vadd.f32 1.4214138, %v162_v60  ;;  %v163_v0 = vmul.f32 %v249_v55, %v161_v61 }
 0x23a   :  { %v166_v1 = vmul.f32 %v247_v52, %v164_v62  ;;  %v165_v2 = vadd.f32 1.4214138, %v163_v0 }
 0x23c   :  { %v168_v3 = vadd.f32 -0.28449672, %v166_v1  ;;  %v167_v4 = vmul.f32 %v249_v55, %v165_v2 }
 0x23e   :  { %v170_v5 = vmul.f32 %v247_v52, %v168_v3  ;;  %v169_v6 = vadd.f32 -0.28449672, %v167_v4 }
 0x240   :  { %v172_v7 = vadd.f32 0.2548296, %v170_v5  ;;  %v171_v8 = vmul.f32 %v249_v55, %v169_v6 }
 0x242   :  { %v174_v9 = vmul.f32 %v247_v52, %v172_v7  ;;  %v173_v11 = vadd.f32 0.2548296, %v171_v8 }
 0x244   :  { %v184_v12 = vmul.f32 %v251_v10, %v174_v9  ;;  %v175_v13 = vmul.f32 %v249_v55, %v173_v11 }
 0x246   :  { %v186_v15 = vsub.f32 1.0, %v184_v12  ;;  %v185_v16 = vmul.f32 %v253_v14, %v175_v13 }
 0x248   :  { %v190_v17 = vsub.f32 0.0, %v186_v15  ;;  %v187_v18 = vsub.f32 1.0, %v185_v16 }
 0x24a   :  { %v192_v19 = vsel %vm188_vm2, %v190_v17, %v186_v15  ;;  %v191_v20 = vsub.f32 0.0, %v187_v18 }
 0x24b   :  { %v194_v21 = vadd.f32 1.0, %v192_v19 }
 0x24c   :  { %v193_v22 = vsel %vm189_vm3, %v191_v20, %v187_v18 }
 0x24d   :  { %v195_v25 = vadd.f32 1.0, %v193_v22  ;;  %v196_v26 = vmul.f32 %v194_v21, %v144_v23 }
 0x24f   :  { %v197_v27 = vmul.f32 %v195_v25, %v145_v24 }
 0x251   :  { %v225_v28 = vpack.c.bf16 %v197_v27, %v196_v26 }
 0x253   :  { %226 = vst [vmem:[%s321_s5] sm:$0xff] %v225_v28  }

// kernel: gpt_forward.13
= control target key start
LH: loop header
LB: loop body
LE: loop exit
PB: predicated region body
PF: predicated region fallthrough
CT: control target
= control target key end

     0   :  { %v132_v0 = vmov 0.0   ;;  %vm133_vm0 = vmmov 0   ;;  %vm30_vm1 = vcmask 261120   ;;  %s183_s2 = inlined_call_operand.vmem [shape: bf16[32,128], index: 2, kind: input, shape index: {}]   ;;  %s184_s0 = inlined_call_operand.vmem [shape: bf16[16,32], index: 0, kind: input, shape index: {}]   ;;  %s185_s3 = inlined_call_operand.vmem [shape: f32[1,128], index: 3, kind: input, shape index: {}]   ;;  %s186_s1 = inlined_call_operand.vmem [shape: f32[16,128], index: 1, kind: input, shape index: {}]   ;;  %s187_s4 = inlined_call_operand.vmem [shape: f32[16,128], index: 4, kind: output, shape index: {}]  }
   0x1   :  { %119 = vmatprep.subr.bf16.mxu0 %v132_v0  ;;  %v129_v1 = vld [vmem:[%s183_s2] sm:$0xff]   ;;  %123 = vmatprep.mubr.msk.bf16.mxu0 %vm133_vm0, %v132_v0  ;;  %v130_v2 = vld [vmem:[%s183_s2 + $0x8] sm:$0xff]  }
   0x2   :  { %120 = vmatpush3.bf16.msra.mxu0 %v129_v1  ;;  %v131_v3 = vld [vmem:[%s184_s0] sm:$0xff]   ;;  %v102_v11 = vld [vmem:[%s186_s1 + $0x8] sm:$0xff] }
   0x3   :  { %121 = vmatprep.subr.bf16.mxu0 %v132_v0  ;;  %31 = vst.msk [vmem:[#allocation2] sm:$0xff] %vm30_vm1, %v131_v3  ;;  %v112_v5 = vld [vmem:[%s185_s3] ss:$0 sm:$0xff] }
   0x4   :  { %v101_v7 = vld [vmem:[%s186_s1] sm:$0xff] }
   0x6   :  { %122 = vmatpush3.bf16.msra.mxu0 %v130_v2 }
   0xa   :  { %v32_v4 = vld [vmem:[#allocation2] sm:$0xff] }
   0xb   :  { %124 = vmatmul.mubr.msk.bf16.vlgmr.msra.gmra.mrb[0].mxu0 %vm30_vm1, %v32_v4 }
  0xde   :  { %v94_v6 = vpop.f32.mrb[0].mxu0 }
  0xdf   :  { %v95_v8 = vadd.f32 %v112_v5, %v94_v6  ;;  %v125_v9 = vpop.f32.mrb[1].mxu0 }
  0xe0   :  { %v97_v10 = vpop.f32.mrb[2].mxu0 }
  0xe1   :  { %v103_v12 = vadd.f32 %v101_v7, %v95_v8  ;;  %v98_v13 = vadd.f32 %v112_v5, %v97_v10  ;;  %v126_v14 = vpop.f32.mrb[3].mxu0 }
  0xe3   :  { %105 = vst [vmem:[%s187_s4] sm:$0xff] %v103_v12  ;;  %v104_v15 = vadd.f32 %v102_v11, %v98_v13 }
  0xe5   :  { %106 = vst [vmem:[%s187_s4 + $0x8] sm:$0xff] %v104_v15 }

// kernel: gpt_forward.11
= control target key start
LH: loop header
LB: loop body
LE: loop exit
PB: predicated region body
PF: predicated region fallthrough
CT: control target
= control target key end

     0   :  { %vm29_vm0 = vcmask 261120   ;;  %v192_v15 = vmov 0.0   ;;  %vm193_vm1 = vmmov 0   ;;  %s254_s0 = inlined_call_operand.vmem [shape: f32[16,32], index: 0, kind: input, shape index: {}]   ;;  %s255_s3 = inlined_call_operand.vmem [shape: bf16[32,128], index: 3, kind: input, shape index: {}]   ;;  %s256_s1 = inlined_call_operand.vmem [shape: f32[1,32], index: 1, kind: input, shape index: {}]   ;;  %s257_s2 = inlined_call_operand.vmem [shape: f32[1,32], index: 2, kind: input, shape index: {}]   ;;  %s258_s4 = inlined_call_operand.vmem [shape: f32[1,128], index: 4, kind: input, shape index: {}]   ;;  %s259_s5 = inlined_call_operand.vmem [shape: bf16[16,128], index: 5, kind: output, shape index: {}]  }
   0x1   :  { %v25_v0 = vld [vmem:[%s254_s0] sm:$0xff]  ;;  %v26_v1 = vld [vmem:[%s254_s0 + $0x8] sm:$0xff]  ;;  %176 = vmatprep.subr.bf16.mxu0 %v192_v15  ;;  %180 = vmatprep.mubr.msk.bf16.mxu0 %vm193_vm1, %v192_v15 }
   0x2   :  { %v30_v2 = vsel %vm29_vm0, %v25_v0, 0.0  ;;  %v33_v3 = vsel %vm29_vm0, %v26_v1, 0.0  ;;  %v186_v14 = vld [vmem:[%s255_s3] sm:$0xff]   ;;  %v187_v16 = vld [vmem:[%s255_s3 + $0x8] sm:$0xff]  }
   0x3   :  { %31 = vadd.xlane.f32.xlu0 %v30_v2  ;;  %177 = vmatpush3.bf16.msra.mxu0 %v186_v14  ;;  %v158_v25 = vld [vmem:[%s256_s1] ss:$0 sm:$0xff] }
   0x4   :  { %178 = vmatprep.subr.bf16.mxu0 %v192_v15  ;;  %v159_v29 = vld [vmem:[%s257_s2] ss:$0 sm:$0xff] }
   0x5   :  { %v160_v35 = vld [vmem:[%s258_s4] ss:$0 sm:$0xff] }
   0x7   :  { %34 = vadd.xlane.f32.xlu0 %v33_v3  ;;  %179 = vmatpush3.bf16.msra.mxu0 %v187_v16 }
  0x90   :  { %v32_v4 = vpop.xlane.xlu0 %31 }
  0x91   :  { %v37_v5 = vmul.f32 0.03125, %v32_v4 }
  0x93   :  { %v39_v6 = vsub.f32 %v25_v0, %v37_v5 }
  0x94   :  { %v35_v7 = vpop.xlane.xlu0 %34 }
  0x95   :  { %v38_v8 = vmul.f32 0.03125, %v35_v7  ;;  %v41_v9 = vmul.f32 %v39_v6, %v39_v6 }
  0x97   :  { %v40_v10 = vsub.f32 %v26_v1, %v38_v8  ;;  %v43_v11 = vsel %vm29_vm0, %v41_v9, 0.0 }
  0x98   :  { %44 = vadd.xlane.f32.xlu1 %v43_v11 }
  0x99   :  { %v42_v12 = vmul.f32 %v40_v10, %v40_v10 }
  0x9b   :  { %v46_v13 = vsel %vm29_vm0, %v42_v12, 0.0 }
  0x9c   :  { %47 = vadd.xlane.f32.xlu1 %v46_v13 }
 0x125   :  { %v45_v17 = vpop.xlane.xlu1 %44 }
 0x126   :  { %v49_v18 = vmul.f32 0.03125, %v45_v17 }
 0x128   :  { %v51_v19 = vadd.f32 1e-05, %v49_v18 }
 0x129   :  { %v48_v20 = vpop.xlane.xlu1 %47 }
 0x12a   :  { %188 = vrsqrt.f32 %v51_v19  ;;  %v50_v21 = vmul.f32 0.03125, %v48_v20 }
 0x12c   :  { %v52_v22 = vadd.f32 1e-05, %v50_v21 }
 0x12e   :  { %190 = vrsqrt.f32 %v52_v22 }
 0x134   :  { %v189_v23 = vpop.eup %188 }
 0x135   :  { %v55_v24 = vmul.f32 %v189_v23, %v39_v6 }
 0x137   :  { %v63_v27 = vmul.f32 %v158_v25, %v55_v24 }
 0x138   :  { %v191_v26 = vpop.eup %190 }
 0x139   :  { %v56_v28 = vmul.f32 %v191_v26, %v40_v10  ;;  %v71_v31 = vadd.f32 %v159_v29, %v63_v27 }
 0x13b   :  { %v64_v30 = vmul.f32 %v158_v25, %v56_v28 }
 0x13d   :  { %v72_v32 = vadd.f32 %v159_v29, %v64_v30 }
 0x13f   :  { %v73_v33 = vpack.c.bf16 %v72_v32, %v71_v31 }
 0x141   :  { %74 = vst.msk [vmem:[#allocation2] sm:$0xff] %vm29_vm0, %v73_v33 }
 0x148   :  { %v75_v34 = vld [vmem:[#allocation2] sm:$0xff] }
 0x149   :  { %181 = vmatmul.mubr.msk.bf16.vlgmr.msra.gmra.mrb[0].mxu0 %vm29_vm0, %v75_v34 }
 0x21c   :  { %v137_v36 = vpop.f32.mrb[0].mxu0 }
 0x21d   :  { %v182_v37 = vpop.f32.mrb[1].mxu0  ;;  %v138_v39 = vadd.f32 %v160_v35, %v137_v36 }
 0x21e   :  { %v140_v38 = vpop.f32.mrb[2].mxu0 }
 0x21f   :  { %v141_v40 = vadd.f32 %v160_v35, %v140_v38  ;;  %v183_v41 = vpop.f32.mrb[3].mxu0 }
 0x221   :  { %v171_v42 = vpack.c.bf16 %v141_v40, %v138_v39 }
 0x223   :  { %172 = vst [vmem:[%s259_s5] sm:$0xff] %v171_v42  }

// kernel: gpt_forward.12
= control target key start
LH: loop header
LB: loop body
LE: loop exit
PB: predicated region body
PF: predicated region fallthrough
CT: control target
= control target key end

     0   :  { %s1812_s12 = smov 0   ;;  %s1814_s13 = smov 0   ;;  %s1988_s0 = inlined_call_operand.vmem [shape: bf16[2,4,8,8], index: 0, kind: input, shape index: {}]   ;;  %s1989_s1 = inlined_call_operand.vmem [shape: bf16[2,4,8,8], index: 1, kind: input, shape index: {}]   ;;  %s1990_s2 = inlined_call_operand.vmem [shape: bf16[2,4,8,8], index: 2, kind: input, shape index: {}]   ;;  %s1991_s3 = inlined_call_operand.vmem [shape: bf16[2,8,32], index: 3, kind: output, shape index: {}]  }
   0x1   :  { %s1816_s14 = smov 0  }
   0x2 LB: > { %s32_s15 = sadd.s32 1, %s1779_s13  ;;  %p1596_p0 = scmp.ge.s32.totalorder %s1783_s14, 1  ;;  %s1783_s14 = sphi %s1816_s14, %s13_s14   ;;  %s1779_s13 = sphi %s1814_s13, %s1993_s13   ;;  %s1775_s12 = sphi %s1812_s12, %s1992_s12  }
   0x3   : > { %p34_p1 = scmp.ge.s32.totalorder %s32_s15, 2  ;;  %p209_p2 = scmp.lt.s32.totalorder %s1783_s14, 3 }
   0x5   : > { %s1995_s15 = smov (%p34_p1, %s32_s15), 0  ;;  %p210_p3 = pnand %p1596_p0, %p209_p2 }
   0x6   : > { %p258_p4 = scmp.lt.s32.totalorder (!%p210_p3), %s1775_s12, 1  ;;  %vm315_vm0 = vcmask (!%p210_p3), 64512   ;;  %v1785_v0 = vmov (!%p210_p3), 0.0   ;;  %vm1786_vm1 = vmmov (!%p210_p3), 0   ;;  %vm306_vm2 = vcmask (!%p210_p3), 7168   ;;  %s1789_s26 = smov (!%p210_p3), 8  }
   0x7   : > { %213 = sbr.rel (%p210_p3) target bundleno = 951 (0x3b7), region = 32  ;;  %1656 = vmatprep.subr.bf16.mxu0 (!%p210_p3), %v1785_v0  ;;  %316 = vst.msk [vmem:[#allocation4] sm:$0xff] (!%p210_p3), %vm315_vm0, %v1785_v0  ;;  %317 = vst.msk [vmem:[#allocation4 + $0x8] sm:$0xff] (!%p210_p3), %vm315_vm0, %v1785_v0  ;;  %1662 = vmatprep.subr.bf16.mxu1 (!%p210_p3), %v1785_v0  ;;  %v1787_v23 = vmov (!%p210_p3), -inf   ;;  %v1066_v24 = vlaneseq (!%p210_p3)  ;;  %v1788_v51 = vmov (!%p210_p3), 0   ;;  %vm1213_vm4 = vcmask (!%p210_p3), 1043456  }
   0x8   : > { %318 = vst.msk [vmem:[#allocation4 + $0x10] sm:$0xff] (!%p210_p3), %vm315_vm0, %v1785_v0  ;;  %319 = vst.msk [vmem:[#allocation4 + $0x18] sm:$0xff] (!%p210_p3), %vm315_vm0, %v1785_v0  ;;  %1658 = vmatprep.mubr.msk.bf16.mxu0 (!%p210_p3), %vm1786_vm1, %v1785_v0  ;;  %1664 = vmatprep.mubr.msk.bf16.mxu1 (!%p210_p3), %vm1786_vm1, %v1785_v0  ;;  %s1790_s27 = smov (!%p210_p3), 16   ;;  %s1791_s28 = smov (!%p210_p3), 24   ;;  %vm1447_vm5 = vcmask (!%p210_p3), 60416   ;;  %vm1456_vm6 = vcmask (!%p210_p3), 126016  }
   0x9   : > { %307 = vst.msk [vmem:[#allocation2] sm:$0xff] (!%p210_p3), %vm306_vm2, %v1787_v23  ;;  %308 = vst.msk [vmem:[#allocation2 + $0x8] sm:$0xff] (!%p210_p3), %vm306_vm2, %v1787_v23  ;;  %v1067_v25 = vshrl.u32 (!%p210_p3), %v1066_v24, 7  ;;  %v1071_v26 = vand.u32 (!%p210_p3), 127, %v1066_v24  ;;  %1735 = vset.pattern.permute.xlu0 (!%p210_p3), %v1788_v51  ;;  %1736 = vset.pattern.permute.xlu1 (!%p210_p3), %v1788_v51  ;;  %vm1465_vm7 = vcmask (!%p210_p3), 191616   ;;  %vm1474_vm8 = vcmask (!%p210_p3), 257216  }
   0xa   : > { %309 = vst.msk [vmem:[#allocation2 + $0x10] sm:$0xff] (!%p210_p3), %vm306_vm2, %v1787_v23  ;;  %310 = vst.msk [vmem:[#allocation2 + $0x18] sm:$0xff] (!%p210_p3), %vm306_vm2, %v1787_v23 }
   0xb   : > { %311 = vst.msk [vmem:[#allocation3] sm:$0xff] (!%p210_p3), %vm306_vm2, %v1785_v0  ;;  %312 = vst.msk [vmem:[#allocation3 + $0x8] sm:$0xff] (!%p210_p3), %vm306_vm2, %v1785_v0  ;;  %vm1074_vm3 = vcmp.le.s32.totalorder (!%p210_p3), %v1071_v26, %v1067_v25 }
   0xc   : > { %313 = vst.msk [vmem:[#allocation3 + $0x10] sm:$0xff] (!%p210_p3), %vm306_vm2, %v1785_v0  ;;  %314 = vst.msk [vmem:[#allocation3 + $0x18] sm:$0xff] (!%p210_p3), %vm306_vm2, %v1785_v0 }
   0xe   : > { %s1997_s12 = smov (!%p258_p4, %s1775_s12), 1 }
   0xf   : > { %s1847_s16 = sshll.u32 %s1997_s12, 4  ;;  %s1603_s29 = sshll.u32 %s1997_s12, 2 }
  0x10   : > { %s265_s19 = scalar_lea.vmem %s1988_s0, %s1847_s16  ;;  %s275_s22 = scalar_lea.vmem %s1989_s1, %s1847_s16  ;;  %v1909_v52 = vld [vmem:[#allocation2] sm:$0xff]  ;;  %v1914_v55 = vld [vmem:[#allocation2 + $0x8] sm:$0xff] }
  0x11   : > { %v877_v1 = vld [vmem:[%s275_s22] sm:$0xf]  ;;  %v878_v2 = vld [vmem:[%s275_s22 + $0x4] sm:$0xf]  ;;  %v1639_v6 = vld [vmem:[%s265_s19 + $0x8] sm:$0xff]   ;;  %s287_s25 = scalar_lea.vmem %s1990_s2, %s1847_s16  ;;  %s296_s5 = scalar_lea.vmem %s1991_s3, %s1603_s29 }
  0x12   : > { %v886_v3 = vsel %vm315_vm0, %v877_v1, 0  ;;  %v932_v4 = vsel %vm315_vm0, %v878_v2, 0  ;;  %v1632_v5 = vld [vmem:[%s265_s19] sm:$0xff]   ;;  %v879_v9 = vld [vmem:[%s275_s22 + $0x8] sm:$0xf]  ;;  %v1637_v13 = vunpack.c.l.bf16 %v1639_v6  ;;  %v1638_v14 = vunpack.c.h.bf16 %v1639_v6  ;;  %v1924_v59 = vld [vmem:[#allocation2 + $0x10] sm:$0xff] }
  0x13   : > { %1657 = vmatpush3.bf16.xpose.msra.mxu0 %v886_v3  ;;  %1663 = vmatpush3.bf16.xpose.msra.mxu1 %v932_v4  ;;  %v1633_v7 = vunpack.c.l.bf16 %v1632_v5  ;;  %v1634_v8 = vunpack.c.h.bf16 %v1632_v5  ;;  %v880_v12 = vld [vmem:[%s275_s22 + $0xc] sm:$0xf]  ;;  %v978_v17 = vsel %vm315_vm0, %v879_v9, 0  ;;  %v1932_v63 = vld [vmem:[#allocation2 + $0x18] sm:$0xff]  ;;  %v1081_v5 = vld [vmem:[%s287_s25] sm:$0xf] }
  0x14   : > { %1668 = vmatprep.subr.bf16.mxu0 %v1785_v0  ;;  %1674 = vmatprep.subr.bf16.mxu1 %v1785_v0  ;;  %v1024_v18 = vsel %vm315_vm0, %v880_v12, 0  ;;  %v871_v19 = vmul.f32 0.35355338, %v1637_v13  ;;  %v872_v20 = vmul.f32 0.35355338, %v1638_v14  ;;  %v1215_v6 = vsel %vm1213_vm4, %v1081_v5, 0 }
  0x15   : > { %v869_v10 = vmul.f32 0.35355338, %v1633_v7  ;;  %v870_v11 = vmul.f32 0.35355338, %v1634_v8  ;;  %v1082_v7 = vld [vmem:[%s287_s25 + $0x4] sm:$0xf] }
  0x16   : > { %v875_v21 = vpack.c.bf16 %v871_v19, %v871_v19  ;;  %v876_v22 = vpack.c.bf16 %v872_v20, %v872_v20  ;;  %v1261_v8 = vsel %vm1213_vm4, %v1082_v7, 0  ;;  %v1083_v9 = vld [vmem:[%s287_s25 + $0x8] sm:$0xf] }
  0x17   : > { %v873_v15 = vpack.c.bf16 %v869_v10, %v869_v10  ;;  %v874_v16 = vpack.c.bf16 %v870_v11, %v870_v11  ;;  %v1307_v10 = vsel %vm1213_vm4, %v1083_v9, 0  ;;  %v1084_v11 = vld [vmem:[%s287_s25 + $0xc] sm:$0xf] }
  0x18   : > { %v1353_v12 = vsel %vm1213_vm4, %v1084_v11, 0  ;;  %v1179_v5 = vld [vmem:[#allocation4 + $0x8] sm:$0xff] }
  0x1a   : > { %1659 = vmatmul.mubr.msk.bf16.vlgmr.msra.gmra.mrb[0].mxu0 %vm315_vm0, %v873_v15  ;;  %1665 = vmatmul.mubr.msk.bf16.vlgmr.msra.gmra.mrb[0].mxu1 %vm315_vm0, %v874_v16 }
  0x1b   : > { %1669 = vmatpush3.bf16.xpose.msra.mxu0 %v978_v17  ;;  %1675 = vmatpush3.bf16.xpose.msra.mxu1 %v1024_v18 }
  0x1c   : > { %1670 = vmatprep.mubr.msk.bf16.mxu0 %vm1786_vm1, %v1785_v0  ;;  %1676 = vmatprep.mubr.msk.bf16.mxu1 %vm1786_vm1, %v1785_v0 }
  0x1d   : > { %1680 = vmatprep.subr.bf16.mxu0 %v1785_v0  ;;  %1686 = vmatprep.subr.bf16.mxu1 %v1785_v0 }
  0x22   : > { %1671 = vmatmul.mubr.msk.bf16.vlgmr.msra.gmra.mrb[4].mxu0 %vm315_vm0, %v875_v21  ;;  %1677 = vmatmul.mubr.msk.bf16.vlgmr.msra.gmra.mrb[4].mxu1 %vm315_vm0, %v876_v22 }
  0x23   : > { %1682 = vmatprep.mubr.msk.bf16.mxu0 %vm1786_vm1, %v1785_v0  ;;  %1688 = vmatprep.mubr.msk.bf16.mxu1 %vm1786_vm1, %v1785_v0 }
  0x24   : > { %1681 = vmatpush3.bf16.msra.mxu0 %v1215_v6  ;;  %1687 = vmatpush3.bf16.msra.mxu1 %v1261_v8 }
  0x25   : > { %1692 = vmatprep.subr.bf16.mxu0 %v1785_v0  ;;  %1698 = vmatprep.subr.bf16.mxu1 %v1785_v0 }
  0xed   : > { %v922_v27 = vpop.f32.mrb[0].mxu0  ;;  %v968_v28 = vpop.f32.mrb[0].mxu1 }
  0xee   : > { %v1890_v29 = vsel %vm1074_vm3, %v922_v27, -1e+30  ;;  %v1660_v30 = vpop.f32.mrb[1].mxu0  ;;  %v1893_v31 = vsel %vm1074_vm3, %v968_v28, -1e+30  ;;  %v1666_v32 = vpop.f32.mrb[1].mxu1 }
  0xef   : > { %v925_v33 = vpop.f32.mrb[2].mxu0  ;;  %v1089_v34 = vsel %vm315_vm0, %v1890_v29, -inf  ;;  %v971_v35 = vpop.f32.mrb[2].mxu1  ;;  %v1092_v38 = vsel %vm315_vm0, %v1893_v31, -inf }
  0xf0   : > { %1090 = vmax.xlane.f32.xlu0 %v1089_v34  ;;  %v1661_v36 = vpop.f32.mrb[3].mxu0  ;;  %v1667_v37 = vpop.f32.mrb[3].mxu1 }
  0xf4   : > { %1093 = vmax.xlane.f32.xlu0 %v1092_v38 }
  0xf5   : > { %v1014_v39 = vpop.f32.mrb[4].mxu0  ;;  %v1060_v40 = vpop.f32.mrb[4].mxu1 }
  0xf6   : > { %v1900_v41 = vsel %vm1074_vm3, %v1014_v39, -1e+30  ;;  %v1672_v42 = vpop.f32.mrb[5].mxu0  ;;  %v1903_v43 = vsel %vm1074_vm3, %v1060_v40, -1e+30  ;;  %v1678_v44 = vpop.f32.mrb[5].mxu1 }
  0xf7   : > { %v1017_v45 = vpop.f32.mrb[6].mxu0  ;;  %v1095_v46 = vsel %vm315_vm0, %v1900_v41, -inf  ;;  %v1063_v47 = vpop.f32.mrb[6].mxu1  ;;  %v1098_v50 = vsel %vm315_vm0, %v1903_v43, -inf }
  0xf8   : > { %1096 = vmax.xlane.f32.xlu1 %v1095_v46  ;;  %v1673_v48 = vpop.f32.mrb[7].mxu0  ;;  %v1679_v49 = vpop.f32.mrb[7].mxu1  ;;  %v1151_v46 = vld [vmem:[#allocation3 + $0x10] sm:$0xff] }
  0xfc   : > { %1099 = vmax.xlane.f32.xlu1 %v1098_v50  ;;  %v1152_v50 = vld [vmem:[#allocation3 + $0x18] sm:$0xff] }
 0x17d   : > { %v1091_v53 = vpop.xlane.xlu0 %1090 }
 0x17e   : > { %v1912_v54 = vmax.f32 %v1909_v52, %v1091_v53 }
 0x180   : > { %v1137_v56 = vsub.f32 %v1909_v52, %v1912_v54  ;;  %1403 = vst.msk [vmem:[#allocation2] sm:$0xff] %vm306_vm2, %v1912_v54  ;;  %1107 = vperm.xlu0 %1735, %v1912_v54  }
 0x181   : > { %v1094_v57 = vpop.xlane.xlu0 %1093 }
 0x182   : > { %v1922_v58 = vmax.f32 %v1914_v55, %v1094_v57  ;;  %v1141_v42 = vmul.f32 1.442695, %v1137_v56 }
 0x184   : > { %v1138_v60 = vsub.f32 %v1914_v55, %v1922_v58  ;;  %1404 = vst.msk [vmem:[#allocation2 + $0x8] sm:$0xff] %vm306_vm2, %v1922_v58  ;;  %1112 = vperm.xlu1 %1736, %v1922_v58   ;;  %v1149_v58 = vld [vmem:[#allocation3] sm:$0xff] }
 0x185   : > { %v1097_v61 = vpop.xlane.xlu1 %1096 }
 0x186   : > { %v1103_v62 = vmax.f32 %v1924_v59, %v1097_v61 }
 0x188   : > { %v1139_v1 = vsub.f32 %v1924_v59, %v1103_v62  ;;  %1405 = vst.msk [vmem:[#allocation2 + $0x10] sm:$0xff] %vm306_vm2, %v1103_v62  ;;  %1117 = vperm.xlu1 %1736, %v1103_v62  }
 0x189   : > { %v1100_v2 = vpop.xlane.xlu1 %1099 }
 0x18a   : > { %v1104_v3 = vmax.f32 %v1932_v63, %v1100_v2  ;;  %v1145_v36 = vmul.f32 1.442695, %v1139_v1 }
 0x18c   : > { %v1140_v4 = vsub.f32 %v1932_v63, %v1104_v3  ;;  %1406 = vst.msk [vmem:[#allocation2 + $0x18] sm:$0xff] %vm306_vm2, %v1104_v3  ;;  %1122 = vperm.xlu1 %1736, %v1104_v3  }
 0x18e   : > { %v1147_v38 = vmul.f32 1.442695, %v1140_v4 }
 0x1ff   : > { %v1108_v13 = vpop.permute.xlu0 %1107 }
 0x200   : > { %v1125_v14 = vsub.f32 %v1890_v29, %v1108_v13 }
 0x202   : > { %v1129_v15 = vmul.f32 1.442695, %v1125_v14 }
 0x203   : > { %v1113_v16 = vpop.permute.xlu1 %1112 }
 0x204   : > { %1737 = vpow2.f32 %v1129_v15  ;;  %v1126_v17 = vsub.f32 %v1893_v31, %v1113_v16 }
 0x206   : > { %v1131_v18 = vmul.f32 1.442695, %v1126_v17 }
 0x207   : > { %v1118_v19 = vpop.permute.xlu1 %1117 }
 0x208   : > { %1739 = vpow2.f32 %v1131_v18  ;;  %v1127_v20 = vsub.f32 %v1900_v41, %v1118_v19 }
 0x20a   : > { %v1133_v21 = vmul.f32 1.442695, %v1127_v20  ;;  %v1181_v20 = vld [vmem:[#allocation4 + $0x18] sm:$0xff] }
 0x20b   : > { %v1123_v22 = vpop.permute.xlu1 %1122 }
 0x20c   : > { %1741 = vpow2.f32 %v1133_v21  ;;  %v1128_v23 = vsub.f32 %v1903_v43, %v1123_v22  ;;  %v1150_v43 = vld [vmem:[#allocation3 + $0x8] sm:$0xff] }
 0x20e   : > { %v1738_v24 = vpop.eup %1737  ;;  %v1135_v25 = vmul.f32 1.442695, %v1128_v23 }
 0x20f   : > { %v1206_v26 = vpack.c.bf16 %v1738_v24, %v1738_v24  ;;  %v1157_v37 = vsel %vm315_vm0, %v1738_v24, 0.0 }
 0x210   : > { %1743 = vpow2.f32 %v1135_v25 }
 0x211   : > { %1683 = vmatmul.mubr.msk.bf16.vlgmr.msra.gmra.mrb[8].mxu0 %vm315_vm0, %v1206_v26  ;;  %1745 = vpow2.f32 %v1145_v36 }
 0x212   : > { %v1740_v27 = vpop.eup %1739  ;;  %1693 = vmatpush3.bf16.msra.mxu0 %v1307_v10  ;;  %1694 = vmatprep.mubr.msk.bf16.mxu0 %vm1786_vm1, %v1785_v0 }
 0x213   : > { %v1160_v28 = vsel %vm315_vm0, %v1740_v27, 0.0  ;;  %v1207_v29 = vpack.c.bf16 %v1740_v27, %v1740_v27 }
 0x214   : > { %1161 = vadd.xlane.f32.xlu1 %v1160_v28 }
 0x215   : > { %1689 = vmatmul.mubr.msk.bf16.vlgmr.msra.gmra.mrb[8].mxu1 %vm315_vm0, %v1207_v29 }
 0x216   : > { %v1742_v30 = vpop.eup %1741  ;;  %1699 = vmatpush3.bf16.msra.mxu1 %v1353_v12  ;;  %1700 = vmatprep.mubr.msk.bf16.mxu1 %vm1786_vm1, %v1785_v0  ;;  %v1143_v0 = vmul.f32 1.442695, %v1138_v60  ;;  %v1180_v12 = vld [vmem:[#allocation4 + $0x10] sm:$0xff] }
 0x217   : > { %v1163_v31 = vsel %vm315_vm0, %v1742_v30, 0.0  ;;  %v1208_v32 = vpack.c.bf16 %v1742_v30, %v1742_v30 }
 0x218   : > { %1164 = vadd.xlane.f32.xlu0 %v1163_v31  ;;  %1747 = vpow2.f32 %v1143_v0 }
 0x219   : > { %1695 = vmatmul.mubr.msk.bf16.vlgmr.msra.gmra.mrb[12].mxu0 %vm315_vm0, %v1208_v32  ;;  %1749 = vpow2.f32 %v1147_v38 }
 0x21a   : > { %v1744_v33 = vpop.eup %1743  ;;  %1751 = vpow2.f32 %v1141_v42 }
 0x21b   : > { %v1166_v34 = vsel %vm315_vm0, %v1744_v33, 0.0  ;;  %v1209_v35 = vpack.c.bf16 %v1744_v33, %v1744_v33  ;;  %v1746_v39 = vpop.eup %1745 }
 0x21c   : > { %1167 = vadd.xlane.f32.xlu1 %v1166_v34  ;;  %v1155_v48 = vmul.f32 %v1746_v39, %v1151_v46 }
 0x21d   : > { %1701 = vmatmul.mubr.msk.bf16.vlgmr.msra.gmra.mrb[12].mxu1 %vm315_vm0, %v1209_v35 }
 0x220   : > { %1158 = vadd.xlane.f32.xlu1 %v1157_v37 }
 0x222   : > { %v1748_v40 = vpop.eup %1747 }
 0x223   : > { %v1750_v41 = vpop.eup %1749  ;;  %v1154_v44 = vmul.f32 %v1748_v40, %v1150_v43 }
 0x224   : > { %v1156_v53 = vmul.f32 %v1750_v41, %v1152_v50  ;;  %v1752_v55 = vpop.eup %1751 }
 0x225   : > { %v1153_v56 = vmul.f32 %v1752_v55, %v1149_v58 }
 0x22e   : > { %1194 = vperm.xlu0 %1735, %v1746_v39   ;;  %v1178_v39 = vld [vmem:[#allocation4] sm:$0xff] }
 0x231   : > { %1189 = vperm.xlu1 %1736, %v1748_v40  }
 0x235   : > { %1199 = vperm.xlu1 %1736, %v1750_v41  }
 0x2a1   : > { %v1162_v45 = vpop.xlane.xlu1 %1161 }
 0x2a2   : > { %v1170_v47 = vadd.f32 %v1162_v45, %v1154_v44 }
 0x2a4   : > { %1175 = vst.msk [vmem:[#allocation3 + $0x8] sm:$0xff] %vm306_vm2, %v1170_v47 }
 0x2a5   : > { %v1165_v49 = vpop.xlane.xlu0 %1164 }
 0x2a6   : > { %v1171_v51 = vadd.f32 %v1165_v49, %v1155_v48 }
 0x2a8   : > { %1176 = vst.msk [vmem:[#allocation3 + $0x10] sm:$0xff] %vm306_vm2, %v1171_v51 }
 0x2a9   : > { %v1168_v57 = vpop.xlane.xlu1 %1167 }
 0x2aa   : > { %v1172_v52 = vadd.f32 %v1168_v57, %v1156_v53 }
 0x2ab   : > { %v1411_v54 = vld [vmem:[#allocation3 + $0x8] sm:$0xff] }
 0x2ac   : > { %1177 = vst.msk [vmem:[#allocation3 + $0x18] sm:$0xff] %vm306_vm2, %v1172_v52  ;;  %1753 = vrcp.f32 %v1411_v54 }
 0x2ad   : > { %v1159_v59 = vpop.xlane.xlu1 %1158  ;;  %v1195_v13 = vpop.permute.xlu0 %1194 }
 0x2ae   : > { %v1169_v60 = vadd.f32 %v1159_v59, %v1153_v56  ;;  %v1204_v18 = vmul.f32 %v1195_v13, %v1180_v12 }
 0x2af   : > { %v1412_v61 = vld [vmem:[#allocation3 + $0x10] sm:$0xff] }
 0x2b0   : > { %1174 = vst.msk [vmem:[#allocation3] sm:$0xff] %vm306_vm2, %v1169_v60  ;;  %1755 = vrcp.f32 %v1412_v61 }
 0x2b1   : > { %v1190_v6 = vpop.permute.xlu1 %1189 }
 0x2b2   : > { %v1203_v10 = vmul.f32 %v1190_v6, %v1179_v5 }
 0x2b3   : > { %v1413_v62 = vld [vmem:[#allocation3 + $0x18] sm:$0xff] }
 0x2b4   : > { %1757 = vrcp.f32 %v1413_v62 }
 0x2b5   : > { %v1200_v21 = vpop.permute.xlu1 %1199 }
 0x2b6   : > { %v1754_v63 = vpop.eup %1753  ;;  %v1205_v26 = vmul.f32 %v1200_v21, %v1181_v20 }
 0x2b7   : > { %1429 = vperm.xlu1 %1736, %v1754_v63   ;;  %v1410_v1 = vld [vmem:[#allocation3] sm:$0xff] }
 0x2b8   : > { %1759 = vrcp.f32 %v1410_v1 }
 0x2ba   : > { %v1756_v2 = vpop.eup %1755 }
 0x2bb   : > { %1434 = vperm.xlu1 %1736, %v1756_v2  }
 0x2be   : > { %v1758_v3 = vpop.eup %1757 }
 0x2bf   : > { %1184 = vperm.xlu1 %1736, %v1752_v55   ;;  %1439 = vperm.xlu0 %1735, %v1758_v3  }
 0x2c2   : > { %v1760_v4 = vpop.eup %1759 }
 0x2c3   : > { %1424 = vperm.xlu0 %1735, %v1760_v4  }
 0x2e4   : > { %v1251_v7 = vpop.f32.mrb[8].mxu0 }
 0x2e5   : > { %v1684_v8 = vpop.f32.mrb[9].mxu0 }
 0x2e6   : > { %v1254_v9 = vpop.f32.mrb[10].mxu0 }
 0x2e7   : > { %v1685_v11 = vpop.f32.mrb[11].mxu0 }
 0x2e8   : > { %v1297_v14 = vpop.f32.mrb[8].mxu1 }
 0x2e9   : > { %v1396_v15 = vadd.f32 %v1297_v14, %v1203_v10  ;;  %v1690_v16 = vpop.f32.mrb[9].mxu1 }
 0x2ea   : > { %v1300_v17 = vpop.f32.mrb[10].mxu1 }
 0x2eb   : > { %1400 = vst.msk [vmem:[#allocation4 + $0x8] sm:$0xff] %vm315_vm0, %v1396_v15  ;;  %v1691_v19 = vpop.f32.mrb[11].mxu1 }
 0x2ec   : > { %v1343_v22 = vpop.f32.mrb[12].mxu0 }
 0x2ed   : > { %v1397_v23 = vadd.f32 %v1343_v22, %v1204_v18  ;;  %v1696_v24 = vpop.f32.mrb[13].mxu0 }
 0x2ee   : > { %v1346_v25 = vpop.f32.mrb[14].mxu0 }
 0x2ef   : > { %1401 = vst.msk [vmem:[#allocation4 + $0x10] sm:$0xff] %vm315_vm0, %v1397_v23  ;;  %v1697_v27 = vpop.f32.mrb[15].mxu0 }
 0x2f0   : > { %v1389_v28 = vpop.f32.mrb[12].mxu1 }
 0x2f1   : > { %v1398_v29 = vadd.f32 %v1389_v28, %v1205_v26  ;;  %v1702_v30 = vpop.f32.mrb[13].mxu1 }
 0x2f2   : > { %v1392_v31 = vpop.f32.mrb[14].mxu1  ;;  %v1419_v33 = vld [vmem:[#allocation4 + $0x8] sm:$0xff] }
 0x2f3   : > { %1402 = vst.msk [vmem:[#allocation4 + $0x18] sm:$0xff] %vm315_vm0, %v1398_v29  ;;  %v1703_v32 = vpop.f32.mrb[15].mxu1 }
 0x2f6   : > { %v1420_v0 = vld [vmem:[#allocation4 + $0x10] sm:$0xff] }
 0x2fa   : > { %v1421_v42 = vld [vmem:[#allocation4 + $0x18] sm:$0xff] }
 0x336   : > { %v1430_v34 = vpop.permute.xlu1 %1429 }
 0x337   : > { %v1443_v35 = vmul.f32 %v1430_v34, %v1419_v33 }
 0x339   : > { %v1628_v36 = vpack.c.bf16 %v1443_v35, %v1443_v35 }
 0x33a   : > { %v1435_v37 = vpop.permute.xlu1 %1434 }
 0x33b   : > { %v1444_v38 = vmul.f32 %v1435_v37, %v1420_v0  ;;  %1453 = vrot.lane.b32.xlu1 %v1628_v36, %s1789_s26 }
 0x33d   : > { %v1629_v40 = vpack.c.bf16 %v1444_v38, %v1444_v38 }
 0x33e   : > { %v1440_v41 = vpop.permute.xlu0 %1439  ;;  %v1185_v43 = vpop.permute.xlu1 %1184 }
 0x33f   : > { %v1445_v44 = vmul.f32 %v1440_v41, %v1421_v42  ;;  %v1202_v45 = vmul.f32 %v1185_v43, %v1178_v39  ;;  %1462 = vrot.lane.b32.xlu0 %v1629_v40, %s1790_s27 }
 0x341   : > { %v1630_v46 = vpack.c.bf16 %v1445_v44, %v1445_v44  ;;  %v1395_v47 = vadd.f32 %v1251_v7, %v1202_v45 }
 0x342   : > { %v1425_v48 = vpop.permute.xlu0 %1424 }
 0x343   : > { %1399 = vst.msk [vmem:[#allocation4] sm:$0xff] %vm315_vm0, %v1395_v47  ;;  %1471 = vrot.lane.b32.xlu1 %v1630_v46, %s1791_s28 }
 0x34a   : > { %v1418_v49 = vld [vmem:[#allocation4] sm:$0xff] }
 0x34b   : > { %v1442_v50 = vmul.f32 %v1425_v48, %v1418_v49 }
 0x34d   : > { %v1446_v51 = vpack.c.bf16 %v1442_v50, %v1442_v50 }
 0x34f   : > { %1448 = vst.msk [vmem:[%s296_s5] sm:$0xf] %vm1447_vm5, %v1446_v51 }
 0x3ad   : > { %v1454_v53 = vpop.permute.xlu1 %1453 }
 0x3ae   : > { %1457 = vst.msk [vmem:[%s296_s5] sm:$0xf] %vm1456_vm6, %v1454_v53 }
 0x3b1   : > { %v1463_v55 = vpop.permute.xlu0 %1462 }
 0x3b2   : > { %1466 = vst.msk [vmem:[%s296_s5] sm:$0xf] %vm1465_vm7, %v1463_v55 }
 0x3b5   : > { %v1472_v57 = vpop.permute.xlu1 %1471 }
 0x3b6   : > { %1475 = vst.msk [vmem:[%s296_s5] sm:$0xf] %vm1474_vm8, %v1472_v57 }
 0x3b7 PF: > { %s13_s14 = sadd.s32 1, %s1783_s14   ;;  %s1992_s12 = smov %s1779_s13 }
 0x3b8   : > { %p10_p5 = scmp.ge.s32.totalorder %s13_s14, 4   ;;  %s1993_s13 = smov %s1995_s15 }
 0x3ba   :  { %12 = sbr.rel (!%p10_p5) target bundleno = 2 (0x2), region = 84 }

// kernel: gpt_forward.15
= control target key start
LH: loop header
LB: loop body
LE: loop exit
PB: predicated region body
PF: predicated region fallthrough
CT: control target
= control target key end

     0   :  { %v204_v0 = vmov 0.0   ;;  %vm205_vm0 = vmmov 0   ;;  %s273_s2 = inlined_call_operand.vmem [shape: bf16[128,128], index: 2, kind: input, shape index: {}]   ;;  %s274_s0 = inlined_call_operand.vmem [shape: bf16[16,128], index: 0, kind: input, shape index: {}]   ;;  %s275_s3 = inlined_call_operand.vmem [shape: f32[1,128], index: 3, kind: input, shape index: {}]   ;;  %s276_s1 = inlined_call_operand.vmem [shape: f32[16,128], index: 1, kind: input, shape index: {}]   ;;  %s277_s4 = inlined_call_operand.vmem [shape: f32[16,128], index: 4, kind: output, shape index: {}]  }
   0x1   :  { %173 = vmatprep.subr.bf16.mxu0 %v204_v0  ;;  %v195_v1 = vld [vmem:[%s273_s2] sm:$0xff]   ;;  %189 = vmatprep.mubr.msk.bf16.mxu0 %vm205_vm0, %v204_v0  ;;  %v196_v2 = vld [vmem:[%s273_s2 + $0x8] sm:$0xff]   ;;  %v197_v3 = vld [vmem:[%s273_s2 + $0x10] sm:$0xff]  }
   0x2   :  { %174 = vmatpush3.bf16.msra.mxu0 %v195_v1  ;;  %v198_v4 = vld [vmem:[%s273_s2 + $0x18] sm:$0xff]   ;;  %v199_v5 = vld [vmem:[%s273_s2 + $0x20] sm:$0xff]   ;;  %v200_v6 = vld [vmem:[%s273_s2 + $0x28] sm:$0xff]  }
   0x3   :  { %175 = vmatprep.subr.bf16.mxu0 %v204_v0  ;;  %v201_v7 = vld [vmem:[%s273_s2 + $0x30] sm:$0xff]   ;;  %v202_v8 = vld [vmem:[%s273_s2 + $0x38] sm:$0xff]   ;;  %v203_v9 = vld [vmem:[%s274_s0] sm:$0xff]  }
   0x4   :  { %v155_v10 = vld [vmem:[%s275_s3] ss:$0 sm:$0xff]  ;;  %v145_v16 = vld [vmem:[%s276_s1 + $0x8] sm:$0xff] }
   0x5   :  { %v144_v12 = vld [vmem:[%s276_s1] sm:$0xff] }
   0x6   :  { %176 = vmatpush3.bf16.msra.mxu0 %v196_v2 }
   0x7   :  { %177 = vmatprep.subr.bf16.mxu0 %v204_v0 }
   0xa   :  { %178 = vmatpush3.bf16.msra.mxu0 %v197_v3 }
   0xb   :  { %179 = vmatprep.subr.bf16.mxu0 %v204_v0 }
   0xe   :  { %180 = vmatpush3.bf16.msra.mxu0 %v198_v4 }
   0xf   :  { %181 = vmatprep.subr.bf16.mxu0 %v204_v0 }
  0x12   :  { %182 = vmatpush3.bf16.msra.mxu0 %v199_v5 }
  0x13   :  { %183 = vmatprep.subr.bf16.mxu0 %v204_v0 }
  0x16   :  { %184 = vmatpush3.bf16.msra.mxu0 %v200_v6 }
  0x17   :  { %185 = vmatprep.subr.bf16.mxu0 %v204_v0 }
  0x1a   :  { %186 = vmatpush3.bf16.msra.mxu0 %v201_v7 }
  0x1b   :  { %187 = vmatprep.subr.bf16.mxu0 %v204_v0 }
  0x1e   :  { %188 = vmatpush3.bf16.msra.mxu0 %v202_v8 }
  0x21   :  { %190 = vmatmul.mubr.bf16.vlgmr.msra.gmra.mrb[0].mxu0 %v203_v9 }
  0xf4   :  { %v137_v11 = vpop.f32.mrb[0].mxu0 }
  0xf5   :  { %v138_v13 = vadd.f32 %v155_v10, %v137_v11  ;;  %v191_v14 = vpop.f32.mrb[1].mxu0 }
  0xf6   :  { %v140_v15 = vpop.f32.mrb[2].mxu0 }
  0xf7   :  { %v146_v17 = vadd.f32 %v144_v12, %v138_v13  ;;  %v141_v18 = vadd.f32 %v155_v10, %v140_v15  ;;  %v192_v19 = vpop.f32.mrb[3].mxu0 }
  0xf9   :  { %148 = vst [vmem:[%s277_s4] sm:$0xff] %v146_v17  ;;  %v147_v20 = vadd.f32 %v145_v16, %v141_v18 }
  0xfb   :  { %149 = vst [vmem:[%s277_s4 + $0x8] sm:$0xff] %v147_v20 }

// kernel: gpt_forward.21
= control target key start
LH: loop header
LB: loop body
LE: loop exit
PB: predicated region body
PF: predicated region fallthrough
CT: control target
= control target key end

     0   :  { %vm29_vm0 = vcmask 261120   ;;  %v175_v15 = vmov 0.0   ;;  %vm176_vm1 = vmmov 0   ;;  %s240_s0 = inlined_call_operand.vmem [shape: f32[16,32], index: 0, kind: input, shape index: {}]   ;;  %s241_s3 = inlined_call_operand.vmem [shape: bf16[32,128], index: 3, kind: input, shape index: {}]   ;;  %s242_s1 = inlined_call_operand.vmem [shape: f32[1,32], index: 1, kind: input, shape index: {}]   ;;  %s243_s2 = inlined_call_operand.vmem [shape: f32[1,32], index: 2, kind: input, shape index: {}]   ;;  %s244_s4 = inlined_call_operand.vmem [shape: f32[1,128], index: 4, kind: input, shape index: {}]   ;;  %s245_s5 = inlined_call_operand.vmem [shape: f32[16,128], index: 5, kind: output, shape index: {}]  }
   0x1   :  { %v25_v0 = vld [vmem:[%s240_s0] sm:$0xff]  ;;  %v26_v1 = vld [vmem:[%s240_s0 + $0x8] sm:$0xff]  ;;  %159 = vmatprep.subr.bf16.mxu0 %v175_v15  ;;  %163 = vmatprep.mubr.msk.bf16.mxu0 %vm176_vm1, %v175_v15 }
   0x2   :  { %v30_v2 = vsel %vm29_vm0, %v25_v0, 0.0  ;;  %v33_v3 = vsel %vm29_vm0, %v26_v1, 0.0  ;;  %v169_v14 = vld [vmem:[%s241_s3] sm:$0xff]   ;;  %v170_v16 = vld [vmem:[%s241_s3 + $0x8] sm:$0xff]  }
   0x3   :  { %31 = vadd.xlane.f32.xlu0 %v30_v2  ;;  %160 = vmatpush3.bf16.msra.mxu0 %v169_v14  ;;  %v150_v25 = vld [vmem:[%s242_s1] ss:$0 sm:$0xff] }
   0x4   :  { %161 = vmatprep.subr.bf16.mxu0 %v175_v15  ;;  %v151_v29 = vld [vmem:[%s243_s2] ss:$0 sm:$0xff] }
   0x5   :  { %v152_v35 = vld [vmem:[%s244_s4] ss:$0 sm:$0xff] }
   0x7   :  { %34 = vadd.xlane.f32.xlu0 %v33_v3  ;;  %162 = vmatpush3.bf16.msra.mxu0 %v170_v16 }
  0x90   :  { %v32_v4 = vpop.xlane.xlu0 %31 }
  0x91   :  { %v37_v5 = vmul.f32 0.03125, %v32_v4 }
  0x93   :  { %v39_v6 = vsub.f32 %v25_v0, %v37_v5 }
  0x94   :  { %v35_v7 = vpop.xlane.xlu0 %34 }
  0x95   :  { %v38_v8 = vmul.f32 0.03125, %v35_v7  ;;  %v41_v9 = vmul.f32 %v39_v6, %v39_v6 }
  0x97   :  { %v40_v10 = vsub.f32 %v26_v1, %v38_v8  ;;  %v43_v11 = vsel %vm29_vm0, %v41_v9, 0.0 }
  0x98   :  { %44 = vadd.xlane.f32.xlu1 %v43_v11 }
  0x99   :  { %v42_v12 = vmul.f32 %v40_v10, %v40_v10 }
  0x9b   :  { %v46_v13 = vsel %vm29_vm0, %v42_v12, 0.0 }
  0x9c   :  { %47 = vadd.xlane.f32.xlu1 %v46_v13 }
 0x125   :  { %v45_v17 = vpop.xlane.xlu1 %44 }
 0x126   :  { %v49_v18 = vmul.f32 0.03125, %v45_v17 }
 0x128   :  { %v51_v19 = vadd.f32 1e-05, %v49_v18 }
 0x129   :  { %v48_v20 = vpop.xlane.xlu1 %47 }
 0x12a   :  { %171 = vrsqrt.f32 %v51_v19  ;;  %v50_v21 = vmul.f32 0.03125, %v48_v20 }
 0x12c   :  { %v52_v22 = vadd.f32 1e-05, %v50_v21 }
 0x12e   :  { %173 = vrsqrt.f32 %v52_v22 }
 0x134   :  { %v172_v23 = vpop.eup %171 }
 0x135   :  { %v55_v24 = vmul.f32 %v172_v23, %v39_v6 }
 0x137   :  { %v63_v27 = vmul.f32 %v150_v25, %v55_v24 }
 0x138   :  { %v174_v26 = vpop.eup %173 }
 0x139   :  { %v56_v28 = vmul.f32 %v174_v26, %v40_v10  ;;  %v71_v31 = vadd.f32 %v151_v29, %v63_v27 }
 0x13b   :  { %v64_v30 = vmul.f32 %v150_v25, %v56_v28 }
 0x13d   :  { %v72_v32 = vadd.f32 %v151_v29, %v64_v30 }
 0x13f   :  { %v73_v33 = vpack.c.bf16 %v72_v32, %v71_v31 }
 0x141   :  { %74 = vst.msk [vmem:[#allocation2] sm:$0xff] %vm29_vm0, %v73_v33 }
 0x148   :  { %v75_v34 = vld [vmem:[#allocation2] sm:$0xff] }
 0x149   :  { %164 = vmatmul.mubr.msk.bf16.vlgmr.msra.gmra.mrb[0].mxu0 %vm29_vm0, %v75_v34 }
 0x21c   :  { %v137_v36 = vpop.f32.mrb[0].mxu0 }
 0x21d   :  { %v138_v37 = vadd.f32 %v152_v35, %v137_v36  ;;  %v165_v38 = vpop.f32.mrb[1].mxu0 }
 0x21e   :  { %v140_v39 = vpop.f32.mrb[2].mxu0 }
 0x21f   :  { %144 = vst [vmem:[%s245_s5] sm:$0xff] %v138_v37  ;;  %v141_v40 = vadd.f32 %v152_v35, %v140_v39  ;;  %v166_v41 = vpop.f32.mrb[3].mxu0 }
 0x221   :  { %145 = vst [vmem:[%s245_s5 + $0x8] sm:$0xff] %v141_v40 }

</bundles_post_ra>
